<compile_context>
chip_gen: v6e
topology: v6e:2x2x1
jax: 0.10.0
libtpu: 0.0.40
codegen_flags: <defaults>
</compile_context>

<pallas_src>
import jax
import jax.numpy as jnp
from jax.experimental import pallas as pl
from jax.experimental.pallas import tpu as pltpu


def _make_fused_lstm_kernel(n_layers, Bk, T, H):
    """Fused, fully unrolled multi-layer LSTM kernel for one batch shard.

    Kernel refs (one grid instance handles Bk batch elements, all T steps):
      x_ref:                        (Bk*T, D0)  time-major input, row = t*Bk + b
      [wih_l, whh_l, bias_l] * L    (D_l,4H) / (H,4H) / (1,4H)
      out_ref:                      (Bk*T, H)   last-layer hidden, row = t*Bk + b
      xg_buf (scratch):             (Bk*T, 4H)  hoisted input projection, f32
      hseq_buf (scratch):           (Bk*T, H)   inter-layer hidden sequence, f32
    """
    G = 4 * H

    def kernel(*refs):
        x_ref = refs[0]
        w_refs = refs[1:1 + 3 * n_layers]
        out_ref = refs[1 + 3 * n_layers]
        xg_buf = refs[2 + 3 * n_layers]
        hseq_buf = refs[3 + 3 * n_layers]

        for layer in range(n_layers):
            # Weights cast once per layer to bf16 for native-rate MXU matmuls.
            wih = w_refs[3 * layer][...].astype(jnp.bfloat16)        # (D_l, 4H)
            whh = w_refs[3 * layer + 1][...].astype(jnp.bfloat16)    # (H, 4H)
            bias = w_refs[3 * layer + 2][...]                        # (1, 4H) f32

            # Layer input: original X for layer 0, previous layer's hidden
            # sequence (already time-major in the scratch) afterwards.
            if layer == 0:
                x2 = x_ref[...].astype(jnp.bfloat16)                 # (Bk*T, D_l)
            else:
                x2 = hseq_buf[...].astype(jnp.bfloat16)              # (Bk*T, H)

            # Hoisted non-recurrent projection for ALL timesteps at once:
            # one bulk MXU matmul + one bias add, parked in VMEM scratch.
            xg_buf[...] = (
                jnp.dot(x2, wih, preferred_element_type=jnp.float32) + bias
            )                                                         # (Bk*T, 4H)

            h = jnp.zeros((Bk, H), jnp.float32)
            c = jnp.zeros((Bk, H), jnp.float32)

            last = layer == n_layers - 1
            dst = out_ref if last else hseq_buf

            # Statically unrolled recurrence: per step only the small
            # h @ W_hh matmul + gate math remain on the serial path.
            for t in range(T):
                gx = xg_buf[t * Bk:(t + 1) * Bk, :]                   # (Bk, 4H) f32
                g = gx + jnp.dot(h.astype(jnp.bfloat16), whh,
                                 preferred_element_type=jnp.float32)  # (Bk, 4H) f32

                # 2 full-width EUP evals instead of 4 sliced ones.
                sig = jax.nn.sigmoid(g)
                th = jnp.tanh(g)
                i_g = sig[:, 0 * H:1 * H]
                f_g = sig[:, 1 * H:2 * H]
                o_g = sig[:, 3 * H:4 * H]
                g_g = th[:, 2 * H:3 * H]

                c = f_g * c + i_g * g_g
                h = o_g * jnp.tanh(c)

                # Direct per-step store: scratch for inter-layer, output ref
                # for the last layer. No list, no end-of-layer rebuild.
                dst[t * Bk:(t + 1) * Bk, :] = h.astype(dst.dtype)

    return kernel


def _num_parallel_cores(batch):
    """Use 2 grid instances (one per TensorCore) only on v7x; else 1."""
    try:
        kind = jax.devices()[0].device_kind.lower()
    except Exception:
        return 1
    if "v7" in kind and batch % 2 == 0:
        return 2
    return 1


def seg_lstm_decoder_forward(X, layer_params):
    """X: (B, T, T_dim, C). layer_params: list of dicts with keys
    'w_ih_t' (D_l, 4H), 'w_hh_t' (H, 4H), 'bias' (4H,). Returns (B, T, H)."""
    B, T, T_dim, C = X.shape
    D = T_dim * C
    n_layers = len(layer_params)
    H = layer_params[0]["w_hh_t"].shape[0]
    G = 4 * H

    ncores = _num_parallel_cores(B)
    Bk = B // ncores
    rows = T * Bk

    # Time-major per-core slab: global row = core*(T*Bk) + t*Bk + b_local.
    # Tiny XLA transpose outside the kernel; inside, every per-step access is
    # a contiguous slice.
    x_tm = (X.reshape(B, T, D)
             .reshape(ncores, Bk, T, D)
             .transpose(0, 2, 1, 3)
             .reshape(ncores * rows, D))

    flat_w = []
    w_specs = []
    for p in layer_params:
        wih = p["w_ih_t"]                                   # (D_l, 4H)
        whh = p["w_hh_t"]                                   # (H, 4H)
        bias = p["bias"].reshape(1, G).astype(jnp.float32)  # (1, 4H)
        flat_w += [wih, whh, bias]
        # Whole-array, grid-invariant (constant index_map) weight blocks.
        w_specs += [
            pl.BlockSpec(wih.shape, lambda i: (0, 0)),
            pl.BlockSpec(whh.shape, lambda i: (0, 0)),
            pl.BlockSpec(bias.shape, lambda i: (0, 0)),
        ]

    kernel = _make_fused_lstm_kernel(n_layers, Bk, T, H)

    # Advisory cost estimate (latency-bound kernel; helps XLA scheduling).
    flops = 0
    for p in layer_params:
        d_l = p["w_ih_t"].shape[0]
        flops += 2 * B * T * d_l * G + 2 * B * T * H * G + 12 * B * T * G
    transc = n_layers * (2 * B * T * G + B * T * H)
    bytes_accessed = int(
        x_tm.size * jnp.dtype(x_tm.dtype).itemsize
        + sum(w.size * jnp.dtype(w.dtype).itemsize for w in flat_w)
        + B * T * H * jnp.dtype(X.dtype).itemsize
    )

    out_tm = pl.pallas_call(
        kernel,
        out_shape=jax.ShapeDtypeStruct((ncores * rows, H), X.dtype),
        grid=(ncores,),
        in_specs=[pl.BlockSpec((rows, D), lambda i: (i, 0))] + w_specs,
        out_specs=pl.BlockSpec((rows, H), lambda i: (i, 0)),
        scratch_shapes=[
            pltpu.VMEM((rows, G), jnp.float32),   # hoisted input projection
            pltpu.VMEM((rows, H), jnp.float32),   # inter-layer hidden sequence
        ],
        compiler_params=pltpu.CompilerParams(
            dimension_semantics=("parallel",)),
        cost_estimate=pl.CostEstimate(
            flops=int(flops),
            transcendentals=int(transc),
            bytes_accessed=bytes_accessed),
    )(x_tm, *flat_w)

    # Undo the time-major layout: (ncores*T*Bk, H) -> (B, T, H).
    return (out_tm.reshape(ncores, T, Bk, H)
                  .transpose(0, 2, 1, 3)
                  .reshape(B, T, H))


def _reference_forward(X, layer_params):
    """Pure-JAX reference (same math, no Pallas) for a correctness check."""
    B, T, T_dim, C = X.shape
    x = X.reshape(B, T, T_dim * C).astype(jnp.float32)
    for p in layer_params:
        wih = p["w_ih_t"].astype(jnp.float32)
        whh = p["w_hh_t"].astype(jnp.float32)
        b = p["bias"].astype(jnp.float32)
        H = whh.shape[0]
        h = jnp.zeros((B, H), jnp.float32)
        c = jnp.zeros((B, H), jnp.float32)
        outs = []
        for t in range(T):
            g = x[:, t, :] @ wih + b + h @ whh
            i_g = jax.nn.sigmoid(g[:, :H])
            f_g = jax.nn.sigmoid(g[:, H:2 * H])
            g_g = jnp.tanh(g[:, 2 * H:3 * H])
            o_g = jax.nn.sigmoid(g[:, 3 * H:])
            c = f_g * c + i_g * g_g
            h = o_g * jnp.tanh(c)
            outs.append(h)
        x = jnp.stack(outs, axis=1)
    return x.astype(X.dtype)


def make_params(key, input_dim, hidden_dim, n_layers, dtype=jnp.float32):
    """PyTorch-style uniform(-k, k) init, k = 1/sqrt(H)."""
    k = 1.0 / jnp.sqrt(jnp.asarray(hidden_dim, jnp.float32))
    params = []
    d_in = input_dim
    for _ in range(n_layers):
        key, k1, k2, k3, k4 = jax.random.split(key, 5)
        w_ih = jax.random.uniform(k1, (4 * hidden_dim, d_in), dtype, -k, k)
        w_hh = jax.random.uniform(k2, (4 * hidden_dim, hidden_dim), dtype, -k, k)
        b_ih = jax.random.uniform(k3, (4 * hidden_dim,), dtype, -k, k)
        b_hh = jax.random.uniform(k4, (4 * hidden_dim,), dtype, -k, k)
        params.append({
            "w_ih_t": w_ih.T,            # (D, 4H), gate column order i,f,g,o
            "w_hh_t": w_hh.T,            # (H, 4H)
            "bias": b_ih + b_hh,         # (4H,)
        })
        d_in = hidden_dim
    return params


if __name__ == "__main__":
    # Small shapes consistent with the module:
    # B=2 batch, T=8 time steps, T_dim=4 segment length, C=3 covariates+1
    # => input_dim = T_dim*C = 12 ; hidden_dim = 32 ; n_layers = 2
    B, T, T_dim, C = 2, 8, 4, 3
    hidden_dim, n_layers = 32, 2
    input_dim = T_dim * C

    key = jax.random.PRNGKey(0)
    kx, kp = jax.random.split(key)
    X = jax.random.normal(kx, (B, T, T_dim, C), jnp.float32)
    params = make_params(kp, input_dim, hidden_dim, n_layers)

    fwd = jax.jit(seg_lstm_decoder_forward)
    out = jax.block_until_ready(fwd(X, params))

    assert out.shape == (B, T, hidden_dim), out.shape
    assert jnp.all(jnp.isfinite(out))

    ref = jax.block_until_ready(_reference_forward(X, params))
    assert jnp.allclose(out, ref, rtol=2e-2, atol=2e-2), float(
        jnp.max(jnp.abs(out - ref)))

    print("KERNEL_OK")
</pallas_src>

<mosaic_0001>
module attributes {stable_mosaic.version = 11 : i64} {
  func.func @kernel(%arg0: i32, %arg1: memref<16x12xf32, #tpu.memory_space<vmem>>, %arg2: memref<12x128xf32, #tpu.memory_space<vmem>>, %arg3: memref<32x128xf32, #tpu.memory_space<vmem>>, %arg4: memref<1x128xf32, #tpu.memory_space<vmem>>, %arg5: memref<32x128xf32, #tpu.memory_space<vmem>>, %arg6: memref<32x128xf32, #tpu.memory_space<vmem>>, %arg7: memref<1x128xf32, #tpu.memory_space<vmem>>, %arg8: memref<16x32xf32, #tpu.memory_space<vmem>>, %arg9: memref<16x128xf32, #tpu.memory_space<vmem>>, %arg10: memref<16x32xf32, #tpu.memory_space<vmem>>) attributes {dimension_semantics = [#tpu.dimension_semantics<parallel>], iteration_bounds = array<i64: 1>, scalar_prefetch = 0 : i64, scratch_operands = 2 : i64, tpu.core_type = #tpu.core_type<tc>, window_params = [{transform_indices = @transform_0, window_bounds = array<i64: 16, 12>}, {pipeline_mode = #tpu.pipeline_mode<synchronous>, transform_indices = @transform_1, window_bounds = array<i64: 12, 128>}, {pipeline_mode = #tpu.pipeline_mode<synchronous>, transform_indices = @transform_2, window_bounds = array<i64: 32, 128>}, {pipeline_mode = #tpu.pipeline_mode<synchronous>, transform_indices = @transform_3, window_bounds = array<i64: 1, 128>}, {pipeline_mode = #tpu.pipeline_mode<synchronous>, transform_indices = @transform_4, window_bounds = array<i64: 32, 128>}, {pipeline_mode = #tpu.pipeline_mode<synchronous>, transform_indices = @transform_5, window_bounds = array<i64: 32, 128>}, {pipeline_mode = #tpu.pipeline_mode<synchronous>, transform_indices = @transform_6, window_bounds = array<i64: 1, 128>}, {transform_indices = @transform_7, window_bounds = array<i64: 16, 32>}]} {
    %c0 = arith.constant 0 : index
    %c0_0 = arith.constant 0 : index
    %0 = vector.load %arg2[%c0, %c0_0] : memref<12x128xf32, #tpu.memory_space<vmem>>, vector<12x128xf32>
    %1 = arith.truncf %0 : vector<12x128xf32> to vector<12x128xbf16>
    %c0_1 = arith.constant 0 : index
    %c0_2 = arith.constant 0 : index
    %2 = vector.load %arg3[%c0_1, %c0_2] : memref<32x128xf32, #tpu.memory_space<vmem>>, vector<32x128xf32>
    %3 = arith.truncf %2 : vector<32x128xf32> to vector<32x128xbf16>
    %c0_3 = arith.constant 0 : index
    %c0_4 = arith.constant 0 : index
    %4 = vector.load %arg4[%c0_3, %c0_4] : memref<1x128xf32, #tpu.memory_space<vmem>>, vector<1x128xf32>
    %c0_5 = arith.constant 0 : index
    %c0_6 = arith.constant 0 : index
    %5 = vector.load %arg1[%c0_5, %c0_6] : memref<16x12xf32, #tpu.memory_space<vmem>>, vector<16x12xf32>
    %6 = arith.truncf %5 : vector<16x12xf32> to vector<16x12xbf16>
    %cst = arith.constant dense<0.000000e+00> : vector<16x128xf32>
    %7 = tpu.matmul %6, %1, %cst {dimension_numbers = #tpu.dot_dimension_numbers<[1], [0], [0], [1], [0, 0, 1, 1], [], []>} : vector<16x12xbf16>, vector<12x128xbf16>, vector<16x128xf32> -> vector<16x128xf32>
    %8 = vector.broadcast %4 : vector<1x128xf32> to vector<16x128xf32>
    %9 = arith.addf %7, %8 : vector<16x128xf32>
    %c0_7 = arith.constant 0 : index
    %c0_8 = arith.constant 0 : index
    %10 = vector.load %arg9[%c0_7, %c0_8] : memref<16x128xf32, #tpu.memory_space<vmem>>, vector<16x128xf32>
    tpu.vector_store %arg9[%c0_7, %c0_8], %9 {strides = array<i32>} : memref<16x128xf32, #tpu.memory_space<vmem>>, vector<16x128xf32>,
    %cst_9 = arith.constant 0.000000e+00 : f32
    %11 = vector.broadcast %cst_9 : f32 to vector<2x32xf32>
    %cst_10 = arith.constant 0.000000e+00 : f32
    %12 = vector.broadcast %cst_10 : f32 to vector<2x32xf32>
    %c0_11 = arith.constant 0 : index
    %c0_12 = arith.constant 0 : index
    %13 = vector.load %arg9[%c0_11, %c0_12] : memref<16x128xf32, #tpu.memory_space<vmem>>, vector<2x128xf32>
    %14 = arith.truncf %11 : vector<2x32xf32> to vector<2x32xbf16>
    %cst_13 = arith.constant dense<0.000000e+00> : vector<2x128xf32>
    %15 = tpu.matmul %14, %3, %cst_13 {dimension_numbers = #tpu.dot_dimension_numbers<[1], [0], [0], [1], [0, 0, 1, 1], [], []>} : vector<2x32xbf16>, vector<32x128xbf16>, vector<2x128xf32> -> vector<2x128xf32>
    %16 = arith.addf %13, %15 : vector<2x128xf32>
    %17 = arith.negf %16 : vector<2x128xf32>
    %18 = math.exp %17 : vector<2x128xf32>
    %cst_14 = arith.constant 1.000000e+00 : f32
    %19 = vector.broadcast %cst_14 : f32 to vector<2x128xf32>
    %20 = arith.addf %19, %18 : vector<2x128xf32>
    %21 = arith.divf %19, %20 : vector<2x128xf32>
    %22 = math.tanh %16 : vector<2x128xf32>
    %23 = vector.extract_strided_slice %21 {offsets = [0, 0], sizes = [2, 32], strides = [1, 1]} : vector<2x128xf32> to vector<2x32xf32>
    %24 = vector.extract_strided_slice %21 {offsets = [0, 32], sizes = [2, 32], strides = [1, 1]} : vector<2x128xf32> to vector<2x32xf32>
    %25 = vector.extract_strided_slice %21 {offsets = [0, 96], sizes = [2, 32], strides = [1, 1]} : vector<2x128xf32> to vector<2x32xf32>
    %26 = vector.extract_strided_slice %22 {offsets = [0, 64], sizes = [2, 32], strides = [1, 1]} : vector<2x128xf32> to vector<2x32xf32>
    %27 = arith.mulf %24, %12 : vector<2x32xf32>
    %28 = arith.mulf %23, %26 : vector<2x32xf32>
    %29 = arith.addf %27, %28 : vector<2x32xf32>
    %30 = math.tanh %29 : vector<2x32xf32>
    %31 = arith.mulf %25, %30 : vector<2x32xf32>
    %c0_15 = arith.constant 0 : index
    %c0_16 = arith.constant 0 : index
    %32 = vector.load %arg10[%c0_15, %c0_16] : memref<16x32xf32, #tpu.memory_space<vmem>>, vector<2x32xf32>
    tpu.vector_store %arg10[%c0_15, %c0_16], %31 {strides = array<i32>} : memref<16x32xf32, #tpu.memory_space<vmem>>, vector<2x32xf32>,
    %c2 = arith.constant 2 : index
    %c0_17 = arith.constant 0 : index
    %33 = vector.load %arg9[%c2, %c0_17] : memref<16x128xf32, #tpu.memory_space<vmem>>, vector<2x128xf32>
    %34 = arith.truncf %31 : vector<2x32xf32> to vector<2x32xbf16>
    %cst_18 = arith.constant dense<0.000000e+00> : vector<2x128xf32>
    %35 = tpu.matmul %34, %3, %cst_18 {dimension_numbers = #tpu.dot_dimension_numbers<[1], [0], [0], [1], [0, 0, 1, 1], [], []>} : vector<2x32xbf16>, vector<32x128xbf16>, vector<2x128xf32> -> vector<2x128xf32>
    %36 = arith.addf %33, %35 : vector<2x128xf32>
    %37 = arith.negf %36 : vector<2x128xf32>
    %38 = math.exp %37 : vector<2x128xf32>
    %cst_19 = arith.constant 1.000000e+00 : f32
    %39 = vector.broadcast %cst_19 : f32 to vector<2x128xf32>
    %40 = arith.addf %39, %38 : vector<2x128xf32>
    %41 = arith.divf %39, %40 : vector<2x128xf32>
    %42 = math.tanh %36 : vector<2x128xf32>
    %43 = vector.extract_strided_slice %41 {offsets = [0, 0], sizes = [2, 32], strides = [1, 1]} : vector<2x128xf32> to vector<2x32xf32>
    %44 = vector.extract_strided_slice %41 {offsets = [0, 32], sizes = [2, 32], strides = [1, 1]} : vector<2x128xf32> to vector<2x32xf32>
    %45 = vector.extract_strided_slice %41 {offsets = [0, 96], sizes = [2, 32], strides = [1, 1]} : vector<2x128xf32> to vector<2x32xf32>
    %46 = vector.extract_strided_slice %42 {offsets = [0, 64], sizes = [2, 32], strides = [1, 1]} : vector<2x128xf32> to vector<2x32xf32>
    %47 = arith.mulf %44, %29 : vector<2x32xf32>
    %48 = arith.mulf %43, %46 : vector<2x32xf32>
    %49 = arith.addf %47, %48 : vector<2x32xf32>
    %50 = math.tanh %49 : vector<2x32xf32>
    %51 = arith.mulf %45, %50 : vector<2x32xf32>
    %c2_20 = arith.constant 2 : index
    %c0_21 = arith.constant 0 : index
    %52 = vector.load %arg10[%c2_20, %c0_21] : memref<16x32xf32, #tpu.memory_space<vmem>>, vector<2x32xf32>
    tpu.vector_store %arg10[%c2_20, %c0_21], %51 {strides = array<i32>} : memref<16x32xf32, #tpu.memory_space<vmem>>, vector<2x32xf32>,
    %c4 = arith.constant 4 : index
    %c0_22 = arith.constant 0 : index
    %53 = vector.load %arg9[%c4, %c0_22] : memref<16x128xf32, #tpu.memory_space<vmem>>, vector<2x128xf32>
    %54 = arith.truncf %51 : vector<2x32xf32> to vector<2x32xbf16>
    %cst_23 = arith.constant dense<0.000000e+00> : vector<2x128xf32>
    %55 = tpu.matmul %54, %3, %cst_23 {dimension_numbers = #tpu.dot_dimension_numbers<[1], [0], [0], [1], [0, 0, 1, 1], [], []>} : vector<2x32xbf16>, vector<32x128xbf16>, vector<2x128xf32> -> vector<2x128xf32>
    %56 = arith.addf %53, %55 : vector<2x128xf32>
    %57 = arith.negf %56 : vector<2x128xf32>
    %58 = math.exp %57 : vector<2x128xf32>
    %cst_24 = arith.constant 1.000000e+00 : f32
    %59 = vector.broadcast %cst_24 : f32 to vector<2x128xf32>
    %60 = arith.addf %59, %58 : vector<2x128xf32>
    %61 = arith.divf %59, %60 : vector<2x128xf32>
    %62 = math.tanh %56 : vector<2x128xf32>
    %63 = vector.extract_strided_slice %61 {offsets = [0, 0], sizes = [2, 32], strides = [1, 1]} : vector<2x128xf32> to vector<2x32xf32>
    %64 = vector.extract_strided_slice %61 {offsets = [0, 32], sizes = [2, 32], strides = [1, 1]} : vector<2x128xf32> to vector<2x32xf32>
    %65 = vector.extract_strided_slice %61 {offsets = [0, 96], sizes = [2, 32], strides = [1, 1]} : vector<2x128xf32> to vector<2x32xf32>
    %66 = vector.extract_strided_slice %62 {offsets = [0, 64], sizes = [2, 32], strides = [1, 1]} : vector<2x128xf32> to vector<2x32xf32>
    %67 = arith.mulf %64, %49 : vector<2x32xf32>
    %68 = arith.mulf %63, %66 : vector<2x32xf32>
    %69 = arith.addf %67, %68 : vector<2x32xf32>
    %70 = math.tanh %69 : vector<2x32xf32>
    %71 = arith.mulf %65, %70 : vector<2x32xf32>
    %c4_25 = arith.constant 4 : index
    %c0_26 = arith.constant 0 : index
    %72 = vector.load %arg10[%c4_25, %c0_26] : memref<16x32xf32, #tpu.memory_space<vmem>>, vector<2x32xf32>
    tpu.vector_store %arg10[%c4_25, %c0_26], %71 {strides = array<i32>} : memref<16x32xf32, #tpu.memory_space<vmem>>, vector<2x32xf32>,
    %c6 = arith.constant 6 : index
    %c0_27 = arith.constant 0 : index
    %73 = vector.load %arg9[%c6, %c0_27] : memref<16x128xf32, #tpu.memory_space<vmem>>, vector<2x128xf32>
    %74 = arith.truncf %71 : vector<2x32xf32> to vector<2x32xbf16>
    %cst_28 = arith.constant dense<0.000000e+00> : vector<2x128xf32>
    %75 = tpu.matmul %74, %3, %cst_28 {dimension_numbers = #tpu.dot_dimension_numbers<[1], [0], [0], [1], [0, 0, 1, 1], [], []>} : vector<2x32xbf16>, vector<32x128xbf16>, vector<2x128xf32> -> vector<2x128xf32>
    %76 = arith.addf %73, %75 : vector<2x128xf32>
    %77 = arith.negf %76 : vector<2x128xf32>
    %78 = math.exp %77 : vector<2x128xf32>
    %cst_29 = arith.constant 1.000000e+00 : f32
    %79 = vector.broadcast %cst_29 : f32 to vector<2x128xf32>
    %80 = arith.addf %79, %78 : vector<2x128xf32>
    %81 = arith.divf %79, %80 : vector<2x128xf32>
    %82 = math.tanh %76 : vector<2x128xf32>
    %83 = vector.extract_strided_slice %81 {offsets = [0, 0], sizes = [2, 32], strides = [1, 1]} : vector<2x128xf32> to vector<2x32xf32>
    %84 = vector.extract_strided_slice %81 {offsets = [0, 32], sizes = [2, 32], strides = [1, 1]} : vector<2x128xf32> to vector<2x32xf32>
    %85 = vector.extract_strided_slice %81 {offsets = [0, 96], sizes = [2, 32], strides = [1, 1]} : vector<2x128xf32> to vector<2x32xf32>
    %86 = vector.extract_strided_slice %82 {offsets = [0, 64], sizes = [2, 32], strides = [1, 1]} : vector<2x128xf32> to vector<2x32xf32>
    %87 = arith.mulf %84, %69 : vector<2x32xf32>
    %88 = arith.mulf %83, %86 : vector<2x32xf32>
    %89 = arith.addf %87, %88 : vector<2x32xf32>
    %90 = math.tanh %89 : vector<2x32xf32>
    %91 = arith.mulf %85, %90 : vector<2x32xf32>
    %c6_30 = arith.constant 6 : index
    %c0_31 = arith.constant 0 : index
    %92 = vector.load %arg10[%c6_30, %c0_31] : memref<16x32xf32, #tpu.memory_space<vmem>>, vector<2x32xf32>
    tpu.vector_store %arg10[%c6_30, %c0_31], %91 {strides = array<i32>} : memref<16x32xf32, #tpu.memory_space<vmem>>, vector<2x32xf32>,
    %c8 = arith.constant 8 : index
    %c0_32 = arith.constant 0 : index
    %93 = vector.load %arg9[%c8, %c0_32] : memref<16x128xf32, #tpu.memory_space<vmem>>, vector<2x128xf32>
    %94 = arith.truncf %91 : vector<2x32xf32> to vector<2x32xbf16>
    %cst_33 = arith.constant dense<0.000000e+00> : vector<2x128xf32>
    %95 = tpu.matmul %94, %3, %cst_33 {dimension_numbers = #tpu.dot_dimension_numbers<[1], [0], [0], [1], [0, 0, 1, 1], [], []>} : vector<2x32xbf16>, vector<32x128xbf16>, vector<2x128xf32> -> vector<2x128xf32>
    %96 = arith.addf %93, %95 : vector<2x128xf32>
    %97 = arith.negf %96 : vector<2x128xf32>
    %98 = math.exp %97 : vector<2x128xf32>
    %cst_34 = arith.constant 1.000000e+00 : f32
    %99 = vector.broadcast %cst_34 : f32 to vector<2x128xf32>
    %100 = arith.addf %99, %98 : vector<2x128xf32>
    %101 = arith.divf %99, %100 : vector<2x128xf32>
    %102 = math.tanh %96 : vector<2x128xf32>
    %103 = vector.extract_strided_slice %101 {offsets = [0, 0], sizes = [2, 32], strides = [1, 1]} : vector<2x128xf32> to vector<2x32xf32>
    %104 = vector.extract_strided_slice %101 {offsets = [0, 32], sizes = [2, 32], strides = [1, 1]} : vector<2x128xf32> to vector<2x32xf32>
    %105 = vector.extract_strided_slice %101 {offsets = [0, 96], sizes = [2, 32], strides = [1, 1]} : vector<2x128xf32> to vector<2x32xf32>
    %106 = vector.extract_strided_slice %102 {offsets = [0, 64], sizes = [2, 32], strides = [1, 1]} : vector<2x128xf32> to vector<2x32xf32>
    %107 = arith.mulf %104, %89 : vector<2x32xf32>
    %108 = arith.mulf %103, %106 : vector<2x32xf32>
    %109 = arith.addf %107, %108 : vector<2x32xf32>
    %110 = math.tanh %109 : vector<2x32xf32>
    %111 = arith.mulf %105, %110 : vector<2x32xf32>
    %c8_35 = arith.constant 8 : index
    %c0_36 = arith.constant 0 : index
    %112 = vector.load %arg10[%c8_35, %c0_36] : memref<16x32xf32, #tpu.memory_space<vmem>>, vector<2x32xf32>
    tpu.vector_store %arg10[%c8_35, %c0_36], %111 {strides = array<i32>} : memref<16x32xf32, #tpu.memory_space<vmem>>, vector<2x32xf32>,
    %c10 = arith.constant 10 : index
    %c0_37 = arith.constant 0 : index
    %113 = vector.load %arg9[%c10, %c0_37] : memref<16x128xf32, #tpu.memory_space<vmem>>, vector<2x128xf32>
    %114 = arith.truncf %111 : vector<2x32xf32> to vector<2x32xbf16>
    %cst_38 = arith.constant dense<0.000000e+00> : vector<2x128xf32>
    %115 = tpu.matmul %114, %3, %cst_38 {dimension_numbers = #tpu.dot_dimension_numbers<[1], [0], [0], [1], [0, 0, 1, 1], [], []>} : vector<2x32xbf16>, vector<32x128xbf16>, vector<2x128xf32> -> vector<2x128xf32>
    %116 = arith.addf %113, %115 : vector<2x128xf32>
    %117 = arith.negf %116 : vector<2x128xf32>
    %118 = math.exp %117 : vector<2x128xf32>
    %cst_39 = arith.constant 1.000000e+00 : f32
    %119 = vector.broadcast %cst_39 : f32 to vector<2x128xf32>
    %120 = arith.addf %119, %118 : vector<2x128xf32>
    %121 = arith.divf %119, %120 : vector<2x128xf32>
    %122 = math.tanh %116 : vector<2x128xf32>
    %123 = vector.extract_strided_slice %121 {offsets = [0, 0], sizes = [2, 32], strides = [1, 1]} : vector<2x128xf32> to vector<2x32xf32>
    %124 = vector.extract_strided_slice %121 {offsets = [0, 32], sizes = [2, 32], strides = [1, 1]} : vector<2x128xf32> to vector<2x32xf32>
    %125 = vector.extract_strided_slice %121 {offsets = [0, 96], sizes = [2, 32], strides = [1, 1]} : vector<2x128xf32> to vector<2x32xf32>
    %126 = vector.extract_strided_slice %122 {offsets = [0, 64], sizes = [2, 32], strides = [1, 1]} : vector<2x128xf32> to vector<2x32xf32>
    %127 = arith.mulf %124, %109 : vector<2x32xf32>
    %128 = arith.mulf %123, %126 : vector<2x32xf32>
    %129 = arith.addf %127, %128 : vector<2x32xf32>
    %130 = math.tanh %129 : vector<2x32xf32>
    %131 = arith.mulf %125, %130 : vector<2x32xf32>
    %c10_40 = arith.constant 10 : index
    %c0_41 = arith.constant 0 : index
    %132 = vector.load %arg10[%c10_40, %c0_41] : memref<16x32xf32, #tpu.memory_space<vmem>>, vector<2x32xf32>
    tpu.vector_store %arg10[%c10_40, %c0_41], %131 {strides = array<i32>} : memref<16x32xf32, #tpu.memory_space<vmem>>, vector<2x32xf32>,
    %c12 = arith.constant 12 : index
    %c0_42 = arith.constant 0 : index
    %133 = vector.load %arg9[%c12, %c0_42] : memref<16x128xf32, #tpu.memory_space<vmem>>, vector<2x128xf32>
    %134 = arith.truncf %131 : vector<2x32xf32> to vector<2x32xbf16>
    %cst_43 = arith.constant dense<0.000000e+00> : vector<2x128xf32>
    %135 = tpu.matmul %134, %3, %cst_43 {dimension_numbers = #tpu.dot_dimension_numbers<[1], [0], [0], [1], [0, 0, 1, 1], [], []>} : vector<2x32xbf16>, vector<32x128xbf16>, vector<2x128xf32> -> vector<2x128xf32>
    %136 = arith.addf %133, %135 : vector<2x128xf32>
    %137 = arith.negf %136 : vector<2x128xf32>
    %138 = math.exp %137 : vector<2x128xf32>
    %cst_44 = arith.constant 1.000000e+00 : f32
    %139 = vector.broadcast %cst_44 : f32 to vector<2x128xf32>
    %140 = arith.addf %139, %138 : vector<2x128xf32>
    %141 = arith.divf %139, %140 : vector<2x128xf32>
    %142 = math.tanh %136 : vector<2x128xf32>
    %143 = vector.extract_strided_slice %141 {offsets = [0, 0], sizes = [2, 32], strides = [1, 1]} : vector<2x128xf32> to vector<2x32xf32>
    %144 = vector.extract_strided_slice %141 {offsets = [0, 32], sizes = [2, 32], strides = [1, 1]} : vector<2x128xf32> to vector<2x32xf32>
    %145 = vector.extract_strided_slice %141 {offsets = [0, 96], sizes = [2, 32], strides = [1, 1]} : vector<2x128xf32> to vector<2x32xf32>
    %146 = vector.extract_strided_slice %142 {offsets = [0, 64], sizes = [2, 32], strides = [1, 1]} : vector<2x128xf32> to vector<2x32xf32>
    %147 = arith.mulf %144, %129 : vector<2x32xf32>
    %148 = arith.mulf %143, %146 : vector<2x32xf32>
    %149 = arith.addf %147, %148 : vector<2x32xf32>
    %150 = math.tanh %149 : vector<2x32xf32>
    %151 = arith.mulf %145, %150 : vector<2x32xf32>
    %c12_45 = arith.constant 12 : index
    %c0_46 = arith.constant 0 : index
    %152 = vector.load %arg10[%c12_45, %c0_46] : memref<16x32xf32, #tpu.memory_space<vmem>>, vector<2x32xf32>
    tpu.vector_store %arg10[%c12_45, %c0_46], %151 {strides = array<i32>} : memref<16x32xf32, #tpu.memory_space<vmem>>, vector<2x32xf32>,
    %c14 = arith.constant 14 : index
    %c0_47 = arith.constant 0 : index
    %153 = vector.load %arg9[%c14, %c0_47] : memref<16x128xf32, #tpu.memory_space<vmem>>, vector<2x128xf32>
    %154 = arith.truncf %151 : vector<2x32xf32> to vector<2x32xbf16>
    %cst_48 = arith.constant dense<0.000000e+00> : vector<2x128xf32>
    %155 = tpu.matmul %154, %3, %cst_48 {dimension_numbers = #tpu.dot_dimension_numbers<[1], [0], [0], [1], [0, 0, 1, 1], [], []>} : vector<2x32xbf16>, vector<32x128xbf16>, vector<2x128xf32> -> vector<2x128xf32>
    %156 = arith.addf %153, %155 : vector<2x128xf32>
    %157 = arith.negf %156 : vector<2x128xf32>
    %158 = math.exp %157 : vector<2x128xf32>
    %cst_49 = arith.constant 1.000000e+00 : f32
    %159 = vector.broadcast %cst_49 : f32 to vector<2x128xf32>
    %160 = arith.addf %159, %158 : vector<2x128xf32>
    %161 = arith.divf %159, %160 : vector<2x128xf32>
    %162 = math.tanh %156 : vector<2x128xf32>
    %163 = vector.extract_strided_slice %161 {offsets = [0, 0], sizes = [2, 32], strides = [1, 1]} : vector<2x128xf32> to vector<2x32xf32>
    %164 = vector.extract_strided_slice %161 {offsets = [0, 32], sizes = [2, 32], strides = [1, 1]} : vector<2x128xf32> to vector<2x32xf32>
    %165 = vector.extract_strided_slice %161 {offsets = [0, 96], sizes = [2, 32], strides = [1, 1]} : vector<2x128xf32> to vector<2x32xf32>
    %166 = vector.extract_strided_slice %162 {offsets = [0, 64], sizes = [2, 32], strides = [1, 1]} : vector<2x128xf32> to vector<2x32xf32>
    %167 = arith.mulf %164, %149 : vector<2x32xf32>
    %168 = arith.mulf %163, %166 : vector<2x32xf32>
    %169 = arith.addf %167, %168 : vector<2x32xf32>
    %170 = math.tanh %169 : vector<2x32xf32>
    %171 = arith.mulf %165, %170 : vector<2x32xf32>
    %c14_50 = arith.constant 14 : index
    %c0_51 = arith.constant 0 : index
    %172 = vector.load %arg10[%c14_50, %c0_51] : memref<16x32xf32, #tpu.memory_space<vmem>>, vector<2x32xf32>
    tpu.vector_store %arg10[%c14_50, %c0_51], %171 {strides = array<i32>} : memref<16x32xf32, #tpu.memory_space<vmem>>, vector<2x32xf32>,
    %c0_52 = arith.constant 0 : index
    %c0_53 = arith.constant 0 : index
    %173 = vector.load %arg5[%c0_52, %c0_53] : memref<32x128xf32, #tpu.memory_space<vmem>>, vector<32x128xf32>
    %174 = arith.truncf %173 : vector<32x128xf32> to vector<32x128xbf16>
    %c0_54 = arith.constant 0 : index
    %c0_55 = arith.constant 0 : index
    %175 = vector.load %arg6[%c0_54, %c0_55] : memref<32x128xf32, #tpu.memory_space<vmem>>, vector<32x128xf32>
    %176 = arith.truncf %175 : vector<32x128xf32> to vector<32x128xbf16>
    %c0_56 = arith.constant 0 : index
    %c0_57 = arith.constant 0 : index
    %177 = vector.load %arg7[%c0_56, %c0_57] : memref<1x128xf32, #tpu.memory_space<vmem>>, vector<1x128xf32>
    %c0_58 = arith.constant 0 : index
    %c0_59 = arith.constant 0 : index
    %178 = vector.load %arg10[%c0_58, %c0_59] : memref<16x32xf32, #tpu.memory_space<vmem>>, vector<16x32xf32>
    %179 = arith.truncf %178 : vector<16x32xf32> to vector<16x32xbf16>
    %cst_60 = arith.constant dense<0.000000e+00> : vector<16x128xf32>
    %180 = tpu.matmul %179, %174, %cst_60 {dimension_numbers = #tpu.dot_dimension_numbers<[1], [0], [0], [1], [0, 0, 1, 1], [], []>} : vector<16x32xbf16>, vector<32x128xbf16>, vector<16x128xf32> -> vector<16x128xf32>
    %181 = vector.broadcast %177 : vector<1x128xf32> to vector<16x128xf32>
    %182 = arith.addf %180, %181 : vector<16x128xf32>
    %c0_61 = arith.constant 0 : index
    %c0_62 = arith.constant 0 : index
    %183 = vector.load %arg9[%c0_61, %c0_62] : memref<16x128xf32, #tpu.memory_space<vmem>>, vector<16x128xf32>
    tpu.vector_store %arg9[%c0_61, %c0_62], %182 {strides = array<i32>} : memref<16x128xf32, #tpu.memory_space<vmem>>, vector<16x128xf32>,
    %cst_63 = arith.constant 0.000000e+00 : f32
    %184 = vector.broadcast %cst_63 : f32 to vector<2x32xf32>
    %cst_64 = arith.constant 0.000000e+00 : f32
    %185 = vector.broadcast %cst_64 : f32 to vector<2x32xf32>
    %c0_65 = arith.constant 0 : index
    %c0_66 = arith.constant 0 : index
    %186 = vector.load %arg9[%c0_65, %c0_66] : memref<16x128xf32, #tpu.memory_space<vmem>>, vector<2x128xf32>
    %187 = arith.truncf %184 : vector<2x32xf32> to vector<2x32xbf16>
    %cst_67 = arith.constant dense<0.000000e+00> : vector<2x128xf32>
    %188 = tpu.matmul %187, %176, %cst_67 {dimension_numbers = #tpu.dot_dimension_numbers<[1], [0], [0], [1], [0, 0, 1, 1], [], []>} : vector<2x32xbf16>, vector<32x128xbf16>, vector<2x128xf32> -> vector<2x128xf32>
    %189 = arith.addf %186, %188 : vector<2x128xf32>
    %190 = arith.negf %189 : vector<2x128xf32>
    %191 = math.exp %190 : vector<2x128xf32>
    %cst_68 = arith.constant 1.000000e+00 : f32
    %192 = vector.broadcast %cst_68 : f32 to vector<2x128xf32>
    %193 = arith.addf %192, %191 : vector<2x128xf32>
    %194 = arith.divf %192, %193 : vector<2x128xf32>
    %195 = math.tanh %189 : vector<2x128xf32>
    %196 = vector.extract_strided_slice %194 {offsets = [0, 0], sizes = [2, 32], strides = [1, 1]} : vector<2x128xf32> to vector<2x32xf32>
    %197 = vector.extract_strided_slice %194 {offsets = [0, 32], sizes = [2, 32], strides = [1, 1]} : vector<2x128xf32> to vector<2x32xf32>
    %198 = vector.extract_strided_slice %194 {offsets = [0, 96], sizes = [2, 32], strides = [1, 1]} : vector<2x128xf32> to vector<2x32xf32>
    %199 = vector.extract_strided_slice %195 {offsets = [0, 64], sizes = [2, 32], strides = [1, 1]} : vector<2x128xf32> to vector<2x32xf32>
    %200 = arith.mulf %197, %185 : vector<2x32xf32>
    %201 = arith.mulf %196, %199 : vector<2x32xf32>
    %202 = arith.addf %200, %201 : vector<2x32xf32>
    %203 = math.tanh %202 : vector<2x32xf32>
    %204 = arith.mulf %198, %203 : vector<2x32xf32>
    %c0_69 = arith.constant 0 : index
    %c0_70 = arith.constant 0 : index
    %205 = vector.load %arg8[%c0_69, %c0_70] : memref<16x32xf32, #tpu.memory_space<vmem>>, vector<2x32xf32>
    tpu.vector_store %arg8[%c0_69, %c0_70], %204 {strides = array<i32>} : memref<16x32xf32, #tpu.memory_space<vmem>>, vector<2x32xf32>,
    %c2_71 = arith.constant 2 : index
    %c0_72 = arith.constant 0 : index
    %206 = vector.load %arg9[%c2_71, %c0_72] : memref<16x128xf32, #tpu.memory_space<vmem>>, vector<2x128xf32>
    %207 = arith.truncf %204 : vector<2x32xf32> to vector<2x32xbf16>
    %cst_73 = arith.constant dense<0.000000e+00> : vector<2x128xf32>
    %208 = tpu.matmul %207, %176, %cst_73 {dimension_numbers = #tpu.dot_dimension_numbers<[1], [0], [0], [1], [0, 0, 1, 1], [], []>} : vector<2x32xbf16>, vector<32x128xbf16>, vector<2x128xf32> -> vector<2x128xf32>
    %209 = arith.addf %206, %208 : vector<2x128xf32>
    %210 = arith.negf %209 : vector<2x128xf32>
    %211 = math.exp %210 : vector<2x128xf32>
    %cst_74 = arith.constant 1.000000e+00 : f32
    %212 = vector.broadcast %cst_74 : f32 to vector<2x128xf32>
    %213 = arith.addf %212, %211 : vector<2x128xf32>
    %214 = arith.divf %212, %213 : vector<2x128xf32>
    %215 = math.tanh %209 : vector<2x128xf32>
    %216 = vector.extract_strided_slice %214 {offsets = [0, 0], sizes = [2, 32], strides = [1, 1]} : vector<2x128xf32> to vector<2x32xf32>
    %217 = vector.extract_strided_slice %214 {offsets = [0, 32], sizes = [2, 32], strides = [1, 1]} : vector<2x128xf32> to vector<2x32xf32>
    %218 = vector.extract_strided_slice %214 {offsets = [0, 96], sizes = [2, 32], strides = [1, 1]} : vector<2x128xf32> to vector<2x32xf32>
    %219 = vector.extract_strided_slice %215 {offsets = [0, 64], sizes = [2, 32], strides = [1, 1]} : vector<2x128xf32> to vector<2x32xf32>
    %220 = arith.mulf %217, %202 : vector<2x32xf32>
    %221 = arith.mulf %216, %219 : vector<2x32xf32>
    %222 = arith.addf %220, %221 : vector<2x32xf32>
    %223 = math.tanh %222 : vector<2x32xf32>
    %224 = arith.mulf %218, %223 : vector<2x32xf32>
    %c2_75 = arith.constant 2 : index
    %c0_76 = arith.constant 0 : index
    %225 = vector.load %arg8[%c2_75, %c0_76] : memref<16x32xf32, #tpu.memory_space<vmem>>, vector<2x32xf32>
    tpu.vector_store %arg8[%c2_75, %c0_76], %224 {strides = array<i32>} : memref<16x32xf32, #tpu.memory_space<vmem>>, vector<2x32xf32>,
    %c4_77 = arith.constant 4 : index
    %c0_78 = arith.constant 0 : index
    %226 = vector.load %arg9[%c4_77, %c0_78] : memref<16x128xf32, #tpu.memory_space<vmem>>, vector<2x128xf32>
    %227 = arith.truncf %224 : vector<2x32xf32> to vector<2x32xbf16>
    %cst_79 = arith.constant dense<0.000000e+00> : vector<2x128xf32>
    %228 = tpu.matmul %227, %176, %cst_79 {dimension_numbers = #tpu.dot_dimension_numbers<[1], [0], [0], [1], [0, 0, 1, 1], [], []>} : vector<2x32xbf16>, vector<32x128xbf16>, vector<2x128xf32> -> vector<2x128xf32>
    %229 = arith.addf %226, %228 : vector<2x128xf32>
    %230 = arith.negf %229 : vector<2x128xf32>
    %231 = math.exp %230 : vector<2x128xf32>
    %cst_80 = arith.constant 1.000000e+00 : f32
    %232 = vector.broadcast %cst_80 : f32 to vector<2x128xf32>
    %233 = arith.addf %232, %231 : vector<2x128xf32>
    %234 = arith.divf %232, %233 : vector<2x128xf32>
    %235 = math.tanh %229 : vector<2x128xf32>
    %236 = vector.extract_strided_slice %234 {offsets = [0, 0], sizes = [2, 32], strides = [1, 1]} : vector<2x128xf32> to vector<2x32xf32>
    %237 = vector.extract_strided_slice %234 {offsets = [0, 32], sizes = [2, 32], strides = [1, 1]} : vector<2x128xf32> to vector<2x32xf32>
    %238 = vector.extract_strided_slice %234 {offsets = [0, 96], sizes = [2, 32], strides = [1, 1]} : vector<2x128xf32> to vector<2x32xf32>
    %239 = vector.extract_strided_slice %235 {offsets = [0, 64], sizes = [2, 32], strides = [1, 1]} : vector<2x128xf32> to vector<2x32xf32>
    %240 = arith.mulf %237, %222 : vector<2x32xf32>
    %241 = arith.mulf %236, %239 : vector<2x32xf32>
    %242 = arith.addf %240, %241 : vector<2x32xf32>
    %243 = math.tanh %242 : vector<2x32xf32>
    %244 = arith.mulf %238, %243 : vector<2x32xf32>
    %c4_81 = arith.constant 4 : index
    %c0_82 = arith.constant 0 : index
    %245 = vector.load %arg8[%c4_81, %c0_82] : memref<16x32xf32, #tpu.memory_space<vmem>>, vector<2x32xf32>
    tpu.vector_store %arg8[%c4_81, %c0_82], %244 {strides = array<i32>} : memref<16x32xf32, #tpu.memory_space<vmem>>, vector<2x32xf32>,
    %c6_83 = arith.constant 6 : index
    %c0_84 = arith.constant 0 : index
    %246 = vector.load %arg9[%c6_83, %c0_84] : memref<16x128xf32, #tpu.memory_space<vmem>>, vector<2x128xf32>
    %247 = arith.truncf %244 : vector<2x32xf32> to vector<2x32xbf16>
    %cst_85 = arith.constant dense<0.000000e+00> : vector<2x128xf32>
    %248 = tpu.matmul %247, %176, %cst_85 {dimension_numbers = #tpu.dot_dimension_numbers<[1], [0], [0], [1], [0, 0, 1, 1], [], []>} : vector<2x32xbf16>, vector<32x128xbf16>, vector<2x128xf32> -> vector<2x128xf32>
    %249 = arith.addf %246, %248 : vector<2x128xf32>
    %250 = arith.negf %249 : vector<2x128xf32>
    %251 = math.exp %250 : vector<2x128xf32>
    %cst_86 = arith.constant 1.000000e+00 : f32
    %252 = vector.broadcast %cst_86 : f32 to vector<2x128xf32>
    %253 = arith.addf %252, %251 : vector<2x128xf32>
    %254 = arith.divf %252, %253 : vector<2x128xf32>
    %255 = math.tanh %249 : vector<2x128xf32>
    %256 = vector.extract_strided_slice %254 {offsets = [0, 0], sizes = [2, 32], strides = [1, 1]} : vector<2x128xf32> to vector<2x32xf32>
    %257 = vector.extract_strided_slice %254 {offsets = [0, 32], sizes = [2, 32], strides = [1, 1]} : vector<2x128xf32> to vector<2x32xf32>
    %258 = vector.extract_strided_slice %254 {offsets = [0, 96], sizes = [2, 32], strides = [1, 1]} : vector<2x128xf32> to vector<2x32xf32>
    %259 = vector.extract_strided_slice %255 {offsets = [0, 64], sizes = [2, 32], strides = [1, 1]} : vector<2x128xf32> to vector<2x32xf32>
    %260 = arith.mulf %257, %242 : vector<2x32xf32>
    %261 = arith.mulf %256, %259 : vector<2x32xf32>
    %262 = arith.addf %260, %261 : vector<2x32xf32>
    %263 = math.tanh %262 : vector<2x32xf32>
    %264 = arith.mulf %258, %263 : vector<2x32xf32>
    %c6_87 = arith.constant 6 : index
    %c0_88 = arith.constant 0 : index
    %265 = vector.load %arg8[%c6_87, %c0_88] : memref<16x32xf32, #tpu.memory_space<vmem>>, vector<2x32xf32>
    tpu.vector_store %arg8[%c6_87, %c0_88], %264 {strides = array<i32>} : memref<16x32xf32, #tpu.memory_space<vmem>>, vector<2x32xf32>,
    %c8_89 = arith.constant 8 : index
    %c0_90 = arith.constant 0 : index
    %266 = vector.load %arg9[%c8_89, %c0_90] : memref<16x128xf32, #tpu.memory_space<vmem>>, vector<2x128xf32>
    %267 = arith.truncf %264 : vector<2x32xf32> to vector<2x32xbf16>
    %cst_91 = arith.constant dense<0.000000e+00> : vector<2x128xf32>
    %268 = tpu.matmul %267, %176, %cst_91 {dimension_numbers = #tpu.dot_dimension_numbers<[1], [0], [0], [1], [0, 0, 1, 1], [], []>} : vector<2x32xbf16>, vector<32x128xbf16>, vector<2x128xf32> -> vector<2x128xf32>
    %269 = arith.addf %266, %268 : vector<2x128xf32>
    %270 = arith.negf %269 : vector<2x128xf32>
    %271 = math.exp %270 : vector<2x128xf32>
    %cst_92 = arith.constant 1.000000e+00 : f32
    %272 = vector.broadcast %cst_92 : f32 to vector<2x128xf32>
    %273 = arith.addf %272, %271 : vector<2x128xf32>
    %274 = arith.divf %272, %273 : vector<2x128xf32>
    %275 = math.tanh %269 : vector<2x128xf32>
    %276 = vector.extract_strided_slice %274 {offsets = [0, 0], sizes = [2, 32], strides = [1, 1]} : vector<2x128xf32> to vector<2x32xf32>
    %277 = vector.extract_strided_slice %274 {offsets = [0, 32], sizes = [2, 32], strides = [1, 1]} : vector<2x128xf32> to vector<2x32xf32>
    %278 = vector.extract_strided_slice %274 {offsets = [0, 96], sizes = [2, 32], strides = [1, 1]} : vector<2x128xf32> to vector<2x32xf32>
    %279 = vector.extract_strided_slice %275 {offsets = [0, 64], sizes = [2, 32], strides = [1, 1]} : vector<2x128xf32> to vector<2x32xf32>
    %280 = arith.mulf %277, %262 : vector<2x32xf32>
    %281 = arith.mulf %276, %279 : vector<2x32xf32>
    %282 = arith.addf %280, %281 : vector<2x32xf32>
    %283 = math.tanh %282 : vector<2x32xf32>
    %284 = arith.mulf %278, %283 : vector<2x32xf32>
    %c8_93 = arith.constant 8 : index
    %c0_94 = arith.constant 0 : index
    %285 = vector.load %arg8[%c8_93, %c0_94] : memref<16x32xf32, #tpu.memory_space<vmem>>, vector<2x32xf32>
    tpu.vector_store %arg8[%c8_93, %c0_94], %284 {strides = array<i32>} : memref<16x32xf32, #tpu.memory_space<vmem>>, vector<2x32xf32>,
    %c10_95 = arith.constant 10 : index
    %c0_96 = arith.constant 0 : index
    %286 = vector.load %arg9[%c10_95, %c0_96] : memref<16x128xf32, #tpu.memory_space<vmem>>, vector<2x128xf32>
    %287 = arith.truncf %284 : vector<2x32xf32> to vector<2x32xbf16>
    %cst_97 = arith.constant dense<0.000000e+00> : vector<2x128xf32>
    %288 = tpu.matmul %287, %176, %cst_97 {dimension_numbers = #tpu.dot_dimension_numbers<[1], [0], [0], [1], [0, 0, 1, 1], [], []>} : vector<2x32xbf16>, vector<32x128xbf16>, vector<2x128xf32> -> vector<2x128xf32>
    %289 = arith.addf %286, %288 : vector<2x128xf32>
    %290 = arith.negf %289 : vector<2x128xf32>
    %291 = math.exp %290 : vector<2x128xf32>
    %cst_98 = arith.constant 1.000000e+00 : f32
    %292 = vector.broadcast %cst_98 : f32 to vector<2x128xf32>
    %293 = arith.addf %292, %291 : vector<2x128xf32>
    %294 = arith.divf %292, %293 : vector<2x128xf32>
    %295 = math.tanh %289 : vector<2x128xf32>
    %296 = vector.extract_strided_slice %294 {offsets = [0, 0], sizes = [2, 32], strides = [1, 1]} : vector<2x128xf32> to vector<2x32xf32>
    %297 = vector.extract_strided_slice %294 {offsets = [0, 32], sizes = [2, 32], strides = [1, 1]} : vector<2x128xf32> to vector<2x32xf32>
    %298 = vector.extract_strided_slice %294 {offsets = [0, 96], sizes = [2, 32], strides = [1, 1]} : vector<2x128xf32> to vector<2x32xf32>
    %299 = vector.extract_strided_slice %295 {offsets = [0, 64], sizes = [2, 32], strides = [1, 1]} : vector<2x128xf32> to vector<2x32xf32>
    %300 = arith.mulf %297, %282 : vector<2x32xf32>
    %301 = arith.mulf %296, %299 : vector<2x32xf32>
    %302 = arith.addf %300, %301 : vector<2x32xf32>
    %303 = math.tanh %302 : vector<2x32xf32>
    %304 = arith.mulf %298, %303 : vector<2x32xf32>
    %c10_99 = arith.constant 10 : index
    %c0_100 = arith.constant 0 : index
    %305 = vector.load %arg8[%c10_99, %c0_100] : memref<16x32xf32, #tpu.memory_space<vmem>>, vector<2x32xf32>
    tpu.vector_store %arg8[%c10_99, %c0_100], %304 {strides = array<i32>} : memref<16x32xf32, #tpu.memory_space<vmem>>, vector<2x32xf32>,
    %c12_101 = arith.constant 12 : index
    %c0_102 = arith.constant 0 : index
    %306 = vector.load %arg9[%c12_101, %c0_102] : memref<16x128xf32, #tpu.memory_space<vmem>>, vector<2x128xf32>
    %307 = arith.truncf %304 : vector<2x32xf32> to vector<2x32xbf16>
    %cst_103 = arith.constant dense<0.000000e+00> : vector<2x128xf32>
    %308 = tpu.matmul %307, %176, %cst_103 {dimension_numbers = #tpu.dot_dimension_numbers<[1], [0], [0], [1], [0, 0, 1, 1], [], []>} : vector<2x32xbf16>, vector<32x128xbf16>, vector<2x128xf32> -> vector<2x128xf32>
    %309 = arith.addf %306, %308 : vector<2x128xf32>
    %310 = arith.negf %309 : vector<2x128xf32>
    %311 = math.exp %310 : vector<2x128xf32>
    %cst_104 = arith.constant 1.000000e+00 : f32
    %312 = vector.broadcast %cst_104 : f32 to vector<2x128xf32>
    %313 = arith.addf %312, %311 : vector<2x128xf32>
    %314 = arith.divf %312, %313 : vector<2x128xf32>
    %315 = math.tanh %309 : vector<2x128xf32>
    %316 = vector.extract_strided_slice %314 {offsets = [0, 0], sizes = [2, 32], strides = [1, 1]} : vector<2x128xf32> to vector<2x32xf32>
    %317 = vector.extract_strided_slice %314 {offsets = [0, 32], sizes = [2, 32], strides = [1, 1]} : vector<2x128xf32> to vector<2x32xf32>
    %318 = vector.extract_strided_slice %314 {offsets = [0, 96], sizes = [2, 32], strides = [1, 1]} : vector<2x128xf32> to vector<2x32xf32>
    %319 = vector.extract_strided_slice %315 {offsets = [0, 64], sizes = [2, 32], strides = [1, 1]} : vector<2x128xf32> to vector<2x32xf32>
    %320 = arith.mulf %317, %302 : vector<2x32xf32>
    %321 = arith.mulf %316, %319 : vector<2x32xf32>
    %322 = arith.addf %320, %321 : vector<2x32xf32>
    %323 = math.tanh %322 : vector<2x32xf32>
    %324 = arith.mulf %318, %323 : vector<2x32xf32>
    %c12_105 = arith.constant 12 : index
    %c0_106 = arith.constant 0 : index
    %325 = vector.load %arg8[%c12_105, %c0_106] : memref<16x32xf32, #tpu.memory_space<vmem>>, vector<2x32xf32>
    tpu.vector_store %arg8[%c12_105, %c0_106], %324 {strides = array<i32>} : memref<16x32xf32, #tpu.memory_space<vmem>>, vector<2x32xf32>,
    %c14_107 = arith.constant 14 : index
    %c0_108 = arith.constant 0 : index
    %326 = vector.load %arg9[%c14_107, %c0_108] : memref<16x128xf32, #tpu.memory_space<vmem>>, vector<2x128xf32>
    %327 = arith.truncf %324 : vector<2x32xf32> to vector<2x32xbf16>
    %cst_109 = arith.constant dense<0.000000e+00> : vector<2x128xf32>
    %328 = tpu.matmul %327, %176, %cst_109 {dimension_numbers = #tpu.dot_dimension_numbers<[1], [0], [0], [1], [0, 0, 1, 1], [], []>} : vector<2x32xbf16>, vector<32x128xbf16>, vector<2x128xf32> -> vector<2x128xf32>
    %329 = arith.addf %326, %328 : vector<2x128xf32>
    %330 = arith.negf %329 : vector<2x128xf32>
    %331 = math.exp %330 : vector<2x128xf32>
    %cst_110 = arith.constant 1.000000e+00 : f32
    %332 = vector.broadcast %cst_110 : f32 to vector<2x128xf32>
    %333 = arith.addf %332, %331 : vector<2x128xf32>
    %334 = arith.divf %332, %333 : vector<2x128xf32>
    %335 = math.tanh %329 : vector<2x128xf32>
    %336 = vector.extract_strided_slice %334 {offsets = [0, 0], sizes = [2, 32], strides = [1, 1]} : vector<2x128xf32> to vector<2x32xf32>
    %337 = vector.extract_strided_slice %334 {offsets = [0, 32], sizes = [2, 32], strides = [1, 1]} : vector<2x128xf32> to vector<2x32xf32>
    %338 = vector.extract_strided_slice %334 {offsets = [0, 96], sizes = [2, 32], strides = [1, 1]} : vector<2x128xf32> to vector<2x32xf32>
    %339 = vector.extract_strided_slice %335 {offsets = [0, 64], sizes = [2, 32], strides = [1, 1]} : vector<2x128xf32> to vector<2x32xf32>
    %340 = arith.mulf %337, %322 : vector<2x32xf32>
    %341 = arith.mulf %336, %339 : vector<2x32xf32>
    %342 = arith.addf %340, %341 : vector<2x32xf32>
    %343 = math.tanh %342 : vector<2x32xf32>
    %344 = arith.mulf %338, %343 : vector<2x32xf32>
    %c14_111 = arith.constant 14 : index
    %c0_112 = arith.constant 0 : index
    %345 = vector.load %arg8[%c14_111, %c0_112] : memref<16x32xf32, #tpu.memory_space<vmem>>, vector<2x32xf32>
    tpu.vector_store %arg8[%c14_111, %c0_112], %344 {strides = array<i32>} : memref<16x32xf32, #tpu.memory_space<vmem>>, vector<2x32xf32>,
    return
  }
  func.func @transform_0(%arg0: i32) -> (i32, i32) {
    %c0_i32 = arith.constant 0 : i32
    %c0_i32_0 = arith.constant 0 : i32
    return %arg0, %c0_i32 : i32, i32
  }
  func.func @transform_1(%arg0: i32) -> (i32, i32) {
    %c0_i32 = arith.constant 0 : i32
    %c0_i32_0 = arith.constant 0 : i32
    %c0_i32_1 = arith.constant 0 : i32
    return %c0_i32, %c0_i32_0 : i32, i32
  }
  func.func @transform_2(%arg0: i32) -> (i32, i32) {
    %c0_i32 = arith.constant 0 : i32
    %c0_i32_0 = arith.constant 0 : i32
    %c0_i32_1 = arith.constant 0 : i32
    return %c0_i32, %c0_i32_0 : i32, i32
  }
  func.func @transform_3(%arg0: i32) -> (i32, i32) {
    %c0_i32 = arith.constant 0 : i32
    %c0_i32_0 = arith.constant 0 : i32
    %c0_i32_1 = arith.constant 0 : i32
    return %c0_i32, %c0_i32_0 : i32, i32
  }
  func.func @transform_4(%arg0: i32) -> (i32, i32) {
    %c0_i32 = arith.constant 0 : i32
    %c0_i32_0 = arith.constant 0 : i32
    %c0_i32_1 = arith.constant 0 : i32
    return %c0_i32, %c0_i32_0 : i32, i32
  }
  func.func @transform_5(%arg0: i32) -> (i32, i32) {
    %c0_i32 = arith.constant 0 : i32
    %c0_i32_0 = arith.constant 0 : i32
    %c0_i32_1 = arith.constant 0 : i32
    return %c0_i32, %c0_i32_0 : i32, i32
  }
  func.func @transform_6(%arg0: i32) -> (i32, i32) {
    %c0_i32 = arith.constant 0 : i32
    %c0_i32_0 = arith.constant 0 : i32
    %c0_i32_1 = arith.constant 0 : i32
    return %c0_i32, %c0_i32_0 : i32, i32
  }
  func.func @transform_7(%arg0: i32) -> (i32, i32) {
    %c0_i32 = arith.constant 0 : i32
    %c0_i32_0 = arith.constant 0 : i32
    return %arg0, %c0_i32 : i32, i32
  }
}

</mosaic_0001>

<bundles_post_ra>
// kernel: seg_lstm_decoder_forward.1
= control target key start
LH: loop header
LB: loop body
LE: loop exit
PB: predicated region body
PF: predicated region fallthrough
CT: control target
= control target key end

     0   :  { %12 = vsyncpa [#allocation5], 0  ;;  %s1810_s24 = smov [#allocation4]   ;;  %s2215_s0 = inlined_call_operand.vmem [shape: f32[16,12], index: 0, kind: input, shape index: {}]   ;;  %s2216_s1 = inlined_call_operand.hbm [shape: f32[12,128], index: 1, kind: input, shape index: {}]   ;;  %s2217_s2 = inlined_call_operand.vmem [shape: f32[32,128], index: 2, kind: input, shape index: {}]   ;;  %s2218_s3 = inlined_call_operand.vmem [shape: f32[1,128], index: 3, kind: input, shape index: {}]   ;;  %s2219_s4 = inlined_call_operand.vmem [shape: f32[32,128], index: 4, kind: input, shape index: {}]   ;;  %s2220_s5 = inlined_call_operand.vmem [shape: f32[32,128], index: 5, kind: input, shape index: {}]   ;;  %s2221_s6 = inlined_call_operand.vmem [shape: f32[1,128], index: 6, kind: input, shape index: {}]   ;;  %s2222_s7 = inlined_call_operand.vmem [shape: f32[16,32], index: 7, kind: output, shape index: {}]  }
   0x1   :  { %s20_s25 = sshll.u32 %s1810_s24, 4  ;;  %s21_s25 = int_to_ptr.vmem [resolvable:$true] %s20_s25 }
   0x2   :  { %s1796_s26 = scalar_lea.vmem %s21_s25, 256  ;;  %p1801_p1 = scmp.lt.s32.totalorder %s21_s25, %s21_s25 }
   0x3   :  { %p1797_p0 = scmp.ne.s32.totalorder %s21_s25, %s1796_s26  ;;  %p1802_p2 = scmp.lt.s32.totalorder %s1796_s26, %s1796_s26 }
   0x5   :  { %p1803_p3 = por %p1802_p2, %p1801_p1 }
   0x7   :  { %p1804_p4 = pnand %p1803_p3, %p1797_p0 }
   0x9   :  { %1807 = shalt.err (!%p1804_p4)
}
   0xa   :  { %s1811_s27 = smov 128   ;;  %s1812_s28 = smov 8  }
   0xb   :  { %26 = dma.hbm_to_vmem [thread:$0]  %s2216_s1, 256, %s21_s25, [#allocation5], %s1811_s27, %s1811_s27, %s1812_s28  }
   0xc   :  { %1808 = dma.done.wait [#allocation5], 256  }
   0xd   :  { %1809 = vsyncadd [#allocation5], 4294967040  ;;  %v1813_v0 = vmov 0.0   ;;  %vm1814_vm0 = vmmov 0   ;;  %v41_v1 = vld [vmem:[#allocation4] sm:$0xff]  ;;  %vm64_vm1 = vcmask 1045504  }
   0xe   :  { %1510 = vmatprep.subr.bf16.mxu0 %v1813_v0  ;;  %1516 = vmatprep.subr.bf16.mxu1 %v1813_v0  ;;  %v42_v2 = vld [vmem:[#allocation4 + $0x8] sm:$0xf]  ;;  %v46_v3 = vld [vmem:[%s2217_s2 + $0x10] sm:$0xff]  ;;  %v47_v5 = vld [vmem:[%s2217_s2 + $0x18] sm:$0xff]  ;;  %vm60_vm2 = vcmask 97280   ;;  %v1815_v14 = vmov 0  }
   0xf   :  { %1512 = vmatprep.mubr.msk.bf16.mxu0 %vm1814_vm0, %v1813_v0  ;;  %1520 = vmatprep.mubr.msk.bf16.mxu1 %vm1814_vm0, %v1813_v0  ;;  %v43_v4 = vpack.c.bf16 %v42_v2, %v41_v1  ;;  %v51_v6 = vld [vmem:[%s2215_s0] sm:$0xff]  ;;  %v52_v7 = vld [vmem:[%s2215_s0 + $0x8] sm:$0xff]  ;;  %v1879_v8 = vpack.c.bf16 %v47_v5, %v46_v3  ;;  %s1816_s19 = smov 64   ;;  %vm112_vm3 = vcmask 261120   ;;  %vm185_vm4 = vcmask 254976  }
  0x10   :  { %v44_v9 = vld [vmem:[%s2217_s2] sm:$0xff]  ;;  %v45_v10 = vld [vmem:[%s2217_s2 + $0x8] sm:$0xff]  ;;  %v53_v12 = vpack.c.bf16 %v52_v7, %v51_v6 }
  0x11   :  { %v66_v11 = vsel %vm64_vm1, %v43_v4, 0  ;;  %1517 = vmatpush3.bf16.msra.mxu1 %v1879_v8  ;;  %v1888_v13 = vpack.c.bf16 %v45_v10, %v44_v9  ;;  %v1423_v15 = vld [vmem:[%s2218_s3] ss:$0 sm:$0xff]  ;;  %s1817_s3 = smov 32  }
  0x12   :  { %1511 = vmatpush3.bf16.msra.mxu0 %v66_v11  ;;  %1518 = vmatprep.subr.bf16.mxu1 %v1813_v0 }
  0x13   :  { %1524 = vmatprep.subr.bf16.mxu0 %v1813_v0 }
  0x15   :  { %1513 = vmatmul.mubr.msk.bf16.vlgmr.msra.gmra.mxu0 %vm60_vm2, %v53_v12  ;;  %1519 = vmatpush3.bf16.msra.mxu1 %v1888_v13 }
  0x16   :  { %1525 = vmatpush3.bf16.msra.mxu0 %v1879_v8  ;;  %1528 = vmatprep.mubr.msk.bf16.mxu0 %vm1814_vm0, %v1813_v0 }
  0x17   :  { %1526 = vmatprep.subr.bf16.mxu0 %v1813_v0  ;;  %1532 = vmatprep.subr.bf16.mxu1 %v1813_v0 }
  0x18   :  { %1521 = vmatmul.mubr.bf16.vlgmr.msra.gmra.mxu1 %v1815_v14 }
  0x19   :  { %1533 = vmatpush3.bf16.msra.mxu1 %v1879_v8  ;;  %1536 = vmatprep.mubr.msk.bf16.mxu1 %vm1814_vm0, %v1813_v0 }
  0x1a   :  { %1527 = vmatpush3.bf16.msra.mxu0 %v1888_v13  ;;  %1534 = vmatprep.subr.bf16.mxu1 %v1813_v0 }
  0x1b   :  { %1540 = vmatprep.subr.bf16.mxu0 %v1813_v0 }
  0x1d   :  { %1535 = vmatpush3.bf16.msra.mxu1 %v1888_v13 }
  0x1e   :  { %1548 = vmatprep.subr.bf16.mxu1 %v1813_v0 }
  0xd5   :  { %v102_v16 = vpop.f32.mrf.mxu0 }
  0xd6   :  { %v103_v17 = vadd.f32 %v1423_v15, %v102_v16 }
  0xd7   :  { %v1514_v18 = vpop.f32.mrf.mxu0 }
  0xd8   :  { %109 = vst [vmem:[#allocation2] sm:$0xff] %v103_v17  ;;  %v150_v20 = vpop.f32.mrf.mxu1 }
  0xd9   :  { %v105_v19 = vpop.f32.mrf.mxu0 }
  0xda   :  { %v106_v21 = vadd.f32 %v1423_v15, %v105_v19  ;;  %v1522_v23 = vpop.f32.mrf.mxu1 }
  0xdb   :  { %v1515_v22 = vpop.f32.mrf.mxu0 }
  0xdc   :  { %110 = vst [vmem:[#allocation2 + $0x8] sm:$0xff] %v106_v21  ;;  %v153_v24 = vpop.f32.mrf.mxu1 }
  0xde   :  { %v1523_v26 = vpop.f32.mrf.mxu1 }
  0xdf   :  { %v111_v25 = vld [vmem:[#allocation2] sm:$0x3]  ;;  %v187_v43 = vld [vmem:[#allocation2 + $0x2] sm:$0x3]  ;;  %v265_v1 = vld [vmem:[#allocation2 + $0x4] sm:$0x3] }
  0xe0   :  { %v156_v27 = vadd.f32 %v150_v20, %v111_v25  ;;  %v343_v25 = vld [vmem:[#allocation2 + $0x6] sm:$0x3] }
  0xe2   :  { %1660 = vtanh.f32 %v156_v27  ;;  %v1425_v29 = vmul.f32 -1.442695, %v156_v27 }
  0xe4   :  { %1662 = vpow2.f32 %v1425_v29 }
  0xef   :  { %v1661_v28 = vpop.eup %1660 }
  0xf0   :  { %166 = vrot.lane.b32.xlu0 %v1661_v28, %s1816_s19 }
  0xf1   :  { %v1663_v30 = vpop.eup %1662 }
  0xf2   :  { %v160_v31 = vadd.f32 1.0, %v1663_v30 }
  0xf4   :  { %1664 = vrcp.f32 %v160_v31 }
 0x101   :  { %v1665_v32 = vpop.eup %1664 }
 0x102   :  { %v164_v35 = vmul.f32 0.0, %v1665_v32 }
 0x162   :  { %v167_v33 = vpop.permute.xlu0 %166 }
 0x163   :  { %v169_v34 = vmul.f32 %v1665_v32, %v167_v33 }
 0x165   :  { %171 = vrot.lane.b32.xlu0 %v169_v34, %s1817_s3 }
 0x1d7   :  { %v172_v36 = vpop.permute.xlu0 %171 }
 0x1d8   :  { %v174_v37 = vadd.f32 %v172_v36, %v164_v35 }
 0x1da   :  { %1666 = vtanh.f32 %v174_v37 }
 0x1e7   :  { %v1667_v38 = vpop.eup %1666 }
 0x1e8   :  { %177 = vrot.lane.b32.xlu1 %v1667_v38, %s1816_s19 }
 0x25a   :  { %v178_v39 = vpop.permute.xlu1 %177 }
 0x25b   :  { %v1913_v40 = vmul.f32 %v1665_v32, %v178_v39 }
 0x25d   :  { %v188_v41 = vpack.c.bf16 %v1913_v40, %v1913_v40 }
 0x25f   :  { %190 = vrot.lane.b32.xlu1 %v188_v41, %s1817_s3 }
 0x2d1   :  { %v191_v42 = vpop.permute.xlu1 %190 }
 0x2d2   :  { %1529 = vmatmul.mubr.msk.bf16.vlgmr.msra.gmra.mxu0 %vm112_vm3, %v191_v42 }
 0x2d3   :  { %1541 = vmatpush3.bf16.msra.mxu0 %v1879_v8  ;;  %1544 = vmatprep.mubr.msk.bf16.mxu0 %vm1814_vm0, %v1813_v0 }
 0x2d4   :  { %1542 = vmatprep.subr.bf16.mxu0 %v1813_v0 }
 0x2d7   :  { %1543 = vmatpush3.bf16.msra.mxu0 %v1888_v13 }
 0x2d8   :  { %1556 = vmatprep.subr.bf16.mxu0 %v1813_v0 }
 0x392   :  { %v229_v44 = vpop.f32.mrf.mxu0 }
 0x393   :  { %v235_v45 = vadd.f32 %v229_v44, %v187_v43 }
 0x394   :  { %v1530_v46 = vpop.f32.mrf.mxu0 }
 0x395   :  { %1668 = vtanh.f32 %v235_v45  ;;  %v1427_v50 = vmul.f32 -1.442695, %v235_v45 }
 0x396   :  { %v232_v47 = vpop.f32.mrf.mxu0 }
 0x397   :  { %1670 = vpow2.f32 %v1427_v50  ;;  %v421_v47 = vld [vmem:[#allocation2 + $0x8] sm:$0x3] }
 0x398   :  { %v1531_v48 = vpop.f32.mrf.mxu0 }
 0x3a2   :  { %v1669_v49 = vpop.eup %1668 }
 0x3a3   :  { %245 = vrot.lane.b32.xlu0 %v1669_v49, %s1816_s19 }
 0x3a4   :  { %v1671_v51 = vpop.eup %1670 }
 0x3a5   :  { %v239_v52 = vadd.f32 1.0, %v1671_v51 }
 0x3a7   :  { %1672 = vrcp.f32 %v239_v52 }
 0x3b4   :  { %v1673_v53 = vpop.eup %1672 }
 0x3b5   :  { %v243_v56 = vmul.f32 %v1673_v53, %v174_v37 }
 0x415   :  { %v246_v54 = vpop.permute.xlu0 %245 }
 0x416   :  { %v248_v55 = vmul.f32 %v1673_v53, %v246_v54 }
 0x418   :  { %250 = vrot.lane.b32.xlu1 %v248_v55, %s1817_s3 }
 0x48a   :  { %v251_v57 = vpop.permute.xlu1 %250 }
 0x48b   :  { %v253_v58 = vadd.f32 %v251_v57, %v243_v56 }
 0x48d   :  { %1674 = vtanh.f32 %v253_v58 }
 0x49a   :  { %v1675_v59 = vpop.eup %1674 }
 0x49b   :  { %256 = vrot.lane.b32.xlu0 %v1675_v59, %s1816_s19 }
 0x50d   :  { %v257_v60 = vpop.permute.xlu0 %256 }
 0x50e   :  { %v1928_v61 = vmul.f32 %v1673_v53, %v257_v60 }
 0x510   :  { %v266_v62 = vpack.c.bf16 %v1928_v61, %v1928_v61 }
 0x512   :  { %268 = vrot.lane.b32.xlu1 %v266_v62, %s1817_s3 }
 0x584   :  { %v269_v63 = vpop.permute.xlu1 %268 }
 0x585   :  { %1537 = vmatmul.mubr.msk.bf16.vlgmr.msra.gmra.mxu1 %vm112_vm3, %v269_v63 }
 0x586   :  { %1549 = vmatpush3.bf16.msra.mxu1 %v1879_v8  ;;  %1552 = vmatprep.mubr.msk.bf16.mxu1 %vm1814_vm0, %v1813_v0 }
 0x587   :  { %1550 = vmatprep.subr.bf16.mxu1 %v1813_v0 }
 0x58a   :  { %1551 = vmatpush3.bf16.msra.mxu1 %v1888_v13 }
 0x58b   :  { %1564 = vmatprep.subr.bf16.mxu1 %v1813_v0 }
 0x645   :  { %v307_v2 = vpop.f32.mrf.mxu1 }
 0x646   :  { %v313_v3 = vadd.f32 %v307_v2, %v265_v1 }
 0x647   :  { %v1538_v4 = vpop.f32.mrf.mxu1 }
 0x648   :  { %1676 = vtanh.f32 %v313_v3  ;;  %v1429_v9 = vmul.f32 -1.442695, %v313_v3 }
 0x649   :  { %v310_v5 = vpop.f32.mrf.mxu1 }
 0x64a   :  { %1678 = vpow2.f32 %v1429_v9 }
 0x64b   :  { %v1539_v6 = vpop.f32.mrf.mxu1 }
 0x64c   :  { %v499_v6 = vld [vmem:[#allocation2 + $0xa] sm:$0x3] }
 0x655   :  { %v1677_v7 = vpop.eup %1676 }
 0x656   :  { %323 = vrot.lane.b32.xlu0 %v1677_v7, %s1816_s19 }
 0x657   :  { %v1679_v10 = vpop.eup %1678 }
 0x658   :  { %v317_v11 = vadd.f32 1.0, %v1679_v10 }
 0x65a   :  { %1680 = vrcp.f32 %v317_v11 }
 0x667   :  { %v1681_v12 = vpop.eup %1680 }
 0x668   :  { %v321_v17 = vmul.f32 %v1681_v12, %v253_v58 }
 0x6c8   :  { %v324_v15 = vpop.permute.xlu0 %323 }
 0x6c9   :  { %v326_v16 = vmul.f32 %v1681_v12, %v324_v15 }
 0x6cb   :  { %328 = vrot.lane.b32.xlu1 %v326_v16, %s1817_s3 }
 0x73d   :  { %v329_v18 = vpop.permute.xlu1 %328 }
 0x73e   :  { %v331_v19 = vadd.f32 %v329_v18, %v321_v17 }
 0x740   :  { %1682 = vtanh.f32 %v331_v19 }
 0x74d   :  { %v1683_v20 = vpop.eup %1682 }
 0x74e   :  { %334 = vrot.lane.b32.xlu0 %v1683_v20, %s1816_s19 }
 0x7c0   :  { %v335_v21 = vpop.permute.xlu0 %334 }
 0x7c1   :  { %v1943_v22 = vmul.f32 %v1681_v12, %v335_v21 }
 0x7c3   :  { %v344_v23 = vpack.c.bf16 %v1943_v22, %v1943_v22 }
 0x7c5   :  { %346 = vrot.lane.b32.xlu1 %v344_v23, %s1817_s3 }
 0x837   :  { %v347_v24 = vpop.permute.xlu1 %346 }
 0x838   :  { %1545 = vmatmul.mubr.msk.bf16.vlgmr.msra.gmra.mxu0 %vm112_vm3, %v347_v24 }
 0x839   :  { %1557 = vmatpush3.bf16.msra.mxu0 %v1879_v8  ;;  %1560 = vmatprep.mubr.msk.bf16.mxu0 %vm1814_vm0, %v1813_v0 }
 0x83a   :  { %1558 = vmatprep.subr.bf16.mxu0 %v1813_v0 }
 0x83d   :  { %1559 = vmatpush3.bf16.msra.mxu0 %v1888_v13 }
 0x83e   :  { %1572 = vmatprep.subr.bf16.mxu0 %v1813_v0 }
 0x8f8   :  { %v385_v26 = vpop.f32.mrf.mxu0 }
 0x8f9   :  { %v391_v27 = vadd.f32 %v385_v26, %v343_v25 }
 0x8fa   :  { %v1546_v28 = vpop.f32.mrf.mxu0 }
 0x8fb   :  { %1684 = vtanh.f32 %v391_v27  ;;  %v1431_v32 = vmul.f32 -1.442695, %v391_v27 }
 0x8fc   :  { %v388_v29 = vpop.f32.mrf.mxu0 }
 0x8fd   :  { %1686 = vpow2.f32 %v1431_v32  ;;  %v577_v29 = vld [vmem:[#allocation2 + $0xc] sm:$0x3] }
 0x8fe   :  { %v1547_v30 = vpop.f32.mrf.mxu0 }
 0x908   :  { %v1685_v31 = vpop.eup %1684 }
 0x909   :  { %401 = vrot.lane.b32.xlu0 %v1685_v31, %s1816_s19 }
 0x90a   :  { %v1687_v33 = vpop.eup %1686 }
 0x90b   :  { %v395_v34 = vadd.f32 1.0, %v1687_v33 }
 0x90d   :  { %1688 = vrcp.f32 %v395_v34 }
 0x91a   :  { %v1689_v35 = vpop.eup %1688 }
 0x91b   :  { %v399_v38 = vmul.f32 %v1689_v35, %v331_v19 }
 0x97b   :  { %v402_v36 = vpop.permute.xlu0 %401 }
 0x97c   :  { %v404_v37 = vmul.f32 %v1689_v35, %v402_v36 }
 0x97e   :  { %406 = vrot.lane.b32.xlu1 %v404_v37, %s1817_s3 }
 0x9f0   :  { %v407_v39 = vpop.permute.xlu1 %406 }
 0x9f1   :  { %v409_v41 = vadd.f32 %v407_v39, %v399_v38 }
 0x9f3   :  { %1690 = vtanh.f32 %v409_v41 }
 0xa00   :  { %v1691_v42 = vpop.eup %1690 }
 0xa01   :  { %412 = vrot.lane.b32.xlu0 %v1691_v42, %s1816_s19 }
 0xa73   :  { %v413_v43 = vpop.permute.xlu0 %412 }
 0xa74   :  { %v1958_v44 = vmul.f32 %v1689_v35, %v413_v43 }
 0xa76   :  { %v422_v45 = vpack.c.bf16 %v1958_v44, %v1958_v44 }
 0xa78   :  { %424 = vrot.lane.b32.xlu1 %v422_v45, %s1817_s3 }
 0xaea   :  { %v425_v46 = vpop.permute.xlu1 %424 }
 0xaeb   :  { %1553 = vmatmul.mubr.msk.bf16.vlgmr.msra.gmra.mxu1 %vm112_vm3, %v425_v46 }
 0xaec   :  { %1565 = vmatpush3.bf16.msra.mxu1 %v1879_v8  ;;  %1568 = vmatprep.mubr.msk.bf16.mxu1 %vm1814_vm0, %v1813_v0 }
 0xaed   :  { %1566 = vmatprep.subr.bf16.mxu1 %v1813_v0 }
 0xaf0   :  { %1567 = vmatpush3.bf16.msra.mxu1 %v1888_v13 }
 0xaf1   :  { %1580 = vmatprep.subr.bf16.mxu1 %v1813_v0 }
 0xbab   :  { %v463_v48 = vpop.f32.mrf.mxu1 }
 0xbac   :  { %v469_v49 = vadd.f32 %v463_v48, %v421_v47 }
 0xbad   :  { %v1554_v50 = vpop.f32.mrf.mxu1 }
 0xbae   :  { %1692 = vtanh.f32 %v469_v49  ;;  %v1433_v54 = vmul.f32 -1.442695, %v469_v49 }
 0xbaf   :  { %v466_v51 = vpop.f32.mrf.mxu1 }
 0xbb0   :  { %1694 = vpow2.f32 %v1433_v54 }
 0xbb1   :  { %v1555_v52 = vpop.f32.mrf.mxu1 }
 0xbb2   :  { %v655_v52 = vld [vmem:[#allocation2 + $0xe] sm:$0x3] }
 0xbbb   :  { %v1693_v53 = vpop.eup %1692 }
 0xbbc   :  { %479 = vrot.lane.b32.xlu0 %v1693_v53, %s1816_s19 }
 0xbbd   :  { %v1695_v55 = vpop.eup %1694 }
 0xbbe   :  { %v473_v56 = vadd.f32 1.0, %v1695_v55 }
 0xbc0   :  { %1696 = vrcp.f32 %v473_v56 }
 0xbcd   :  { %v1697_v57 = vpop.eup %1696 }
 0xbce   :  { %v477_v60 = vmul.f32 %v1697_v57, %v409_v41 }
 0xc2e   :  { %v480_v58 = vpop.permute.xlu0 %479 }
 0xc2f   :  { %v482_v59 = vmul.f32 %v1697_v57, %v480_v58 }
 0xc31   :  { %484 = vrot.lane.b32.xlu1 %v482_v59, %s1817_s3 }
 0xca3   :  { %v485_v62 = vpop.permute.xlu1 %484 }
 0xca4   :  { %v487_v63 = vadd.f32 %v485_v62, %v477_v60 }
 0xca6   :  { %1698 = vtanh.f32 %v487_v63 }
 0xcb3   :  { %v1699_v1 = vpop.eup %1698 }
 0xcb4   :  { %490 = vrot.lane.b32.xlu0 %v1699_v1, %s1816_s19 }
 0xd26   :  { %v491_v2 = vpop.permute.xlu0 %490 }
 0xd27   :  { %v1973_v3 = vmul.f32 %v1697_v57, %v491_v2 }
 0xd29   :  { %v500_v4 = vpack.c.bf16 %v1973_v3, %v1973_v3 }
 0xd2b   :  { %502 = vrot.lane.b32.xlu1 %v500_v4, %s1817_s3 }
 0xd9d   :  { %v503_v5 = vpop.permute.xlu1 %502 }
 0xd9e   :  { %1561 = vmatmul.mubr.msk.bf16.vlgmr.msra.gmra.mxu0 %vm112_vm3, %v503_v5 }
 0xd9f   :  { %1573 = vmatpush3.bf16.msra.mxu0 %v1879_v8  ;;  %1576 = vmatprep.mubr.msk.bf16.mxu0 %vm1814_vm0, %v1813_v0 }
 0xda0   :  { %1574 = vmatprep.subr.bf16.mxu0 %v1813_v0 }
 0xda3   :  { %1575 = vmatpush3.bf16.msra.mxu0 %v1888_v13 }
 0xda4   :  { %1588 = vmatprep.subr.bf16.mxu0 %v1813_v0 }
 0xe5e   :  { %v541_v7 = vpop.f32.mrf.mxu0 }
 0xe5f   :  { %v547_v9 = vadd.f32 %v541_v7, %v499_v6 }
 0xe60   :  { %v1562_v10 = vpop.f32.mrf.mxu0 }
 0xe61   :  { %1700 = vtanh.f32 %v547_v9  ;;  %v1435_v8 = vmul.f32 -1.442695, %v547_v9 }
 0xe62   :  { %v544_v11 = vpop.f32.mrf.mxu0 }
 0xe63   :  { %1702 = vpow2.f32 %v1435_v8  ;;  %v736_v11 = vld [vmem:[%s2219_s4 + $0x18] sm:$0xff] }
 0xe64   :  { %v1563_v12 = vpop.f32.mrf.mxu0  ;;  %v742_v8 = vld [vmem:[%s2220_s5 + $0x18] sm:$0xff] }
 0xe65   :  { %v733_v12 = vld [vmem:[%s2219_s4] sm:$0xff] }
 0xe6e   :  { %v1701_v15 = vpop.eup %1700 }
 0xe6f   :  { %557 = vrot.lane.b32.xlu0 %v1701_v15, %s1816_s19 }
 0xe70   :  { %v1703_v16 = vpop.eup %1702 }
 0xe71   :  { %v551_v17 = vadd.f32 1.0, %v1703_v16 }
 0xe73   :  { %1704 = vrcp.f32 %v551_v17 }
 0xe80   :  { %v1705_v18 = vpop.eup %1704 }
 0xe81   :  { %v555_v20 = vmul.f32 %v1705_v18, %v487_v63 }
 0xee1   :  { %v558_v19 = vpop.permute.xlu0 %557 }
 0xee2   :  { %v560_v13 = vmul.f32 %v1705_v18, %v558_v19  ;;  %v740_v19 = vld [vmem:[%s2220_s5 + $0x8] sm:$0xff] }
 0xee4   :  { %562 = vrot.lane.b32.xlu1 %v560_v13, %s1817_s3 }
 0xf56   :  { %v563_v21 = vpop.permute.xlu1 %562 }
 0xf57   :  { %v565_v23 = vadd.f32 %v563_v21, %v555_v20 }
 0xf59   :  { %1706 = vtanh.f32 %v565_v23 }
 0xf66   :  { %v1707_v24 = vpop.eup %1706 }
 0xf67   :  { %568 = vrot.lane.b32.xlu0 %v1707_v24, %s1816_s19 }
 0xfd9   :  { %v569_v25 = vpop.permute.xlu0 %568 }
 0xfda   :  { %v1988_v26 = vmul.f32 %v1705_v18, %v569_v25  ;;  %v739_v18 = vld [vmem:[%s2220_s5] sm:$0xff] }
 0xfdb   :  { %v2053_v20 = vpack.c.bf16 %v740_v19, %v739_v18 }
 0xfdc   :  { %v578_v27 = vpack.c.bf16 %v1988_v26, %v1988_v26 }
 0xfde   :  { %580 = vrot.lane.b32.xlu1 %v578_v27, %s1817_s3 }
0x1050   :  { %v581_v28 = vpop.permute.xlu1 %580 }
0x1051   :  { %1569 = vmatmul.mubr.msk.bf16.vlgmr.msra.gmra.mxu1 %vm112_vm3, %v581_v28 }
0x1052   :  { %1584 = vmatprep.mubr.msk.bf16.mxu1 %vm1814_vm0, %v1813_v0 }
0x1111   :  { %v619_v30 = vpop.f32.mrf.mxu1 }
0x1112   :  { %v625_v31 = vadd.f32 %v619_v30, %v577_v29 }
0x1113   :  { %v1570_v32 = vpop.f32.mrf.mxu1 }
0x1114   :  { %1708 = vtanh.f32 %v625_v31  ;;  %v1437_v36 = vmul.f32 -1.442695, %v625_v31 }
0x1115   :  { %v622_v33 = vpop.f32.mrf.mxu1 }
0x1116   :  { %1710 = vpow2.f32 %v1437_v36  ;;  %v1440_v33 = vld [vmem:[%s2221_s6] ss:$0 sm:$0xff] }
0x1117   :  { %v1571_v34 = vpop.f32.mrf.mxu1 }
0x1121   :  { %v1709_v35 = vpop.eup %1708 }
0x1122   :  { %635 = vrot.lane.b32.xlu0 %v1709_v35, %s1816_s19 }
0x1123   :  { %v1711_v37 = vpop.eup %1710 }
0x1124   :  { %v629_v38 = vadd.f32 1.0, %v1711_v37 }
0x1126   :  { %1712 = vrcp.f32 %v629_v38 }
0x1133   :  { %v1713_v39 = vpop.eup %1712 }
0x1134   :  { %v633_v43 = vmul.f32 %v1713_v39, %v565_v23 }
0x1194   :  { %v636_v41 = vpop.permute.xlu0 %635 }
0x1195   :  { %v638_v42 = vmul.f32 %v1713_v39, %v636_v41 }
0x1197   :  { %640 = vrot.lane.b32.xlu1 %v638_v42, %s1817_s3 }
0x1209   :  { %v641_v45 = vpop.permute.xlu1 %640 }
0x120a   :  { %v643_v46 = vadd.f32 %v641_v45, %v633_v43 }
0x120c   :  { %1714 = vtanh.f32 %v643_v46 }
0x1219   :  { %v1715_v47 = vpop.eup %1714 }
0x121a   :  { %646 = vrot.lane.b32.xlu0 %v1715_v47, %s1816_s19 }
0x128c   :  { %v647_v48 = vpop.permute.xlu0 %646 }
0x128d   :  { %v649_v49 = vmul.f32 %v1713_v39, %v647_v48 }
0x128f   :  { %v656_v50 = vpack.c.bf16 %v649_v49, %v649_v49 }
0x1291   :  { %658 = vrot.lane.b32.xlu1 %v656_v50, %s1817_s3 }
0x1303   :  { %v659_v51 = vpop.permute.xlu1 %658 }
0x1304   :  { %1577 = vmatmul.mubr.msk.bf16.vlgmr.msra.gmra.mxu0 %vm112_vm3, %v659_v51 }
0x1305   :  { %1592 = vmatprep.mubr.msk.bf16.mxu0 %vm1814_vm0, %v1813_v0 }
0x13c4   :  { %v697_v53 = vpop.f32.mrf.mxu0 }
0x13c5   :  { %v703_v54 = vadd.f32 %v697_v53, %v655_v52 }
0x13c6   :  { %v1578_v55 = vpop.f32.mrf.mxu0 }
0x13c7   :  { %1716 = vtanh.f32 %v703_v54  ;;  %v1439_v59 = vmul.f32 -1.442695, %v703_v54 }
0x13c8   :  { %v700_v56 = vpop.f32.mrf.mxu0 }
0x13c9   :  { %1718 = vpow2.f32 %v1439_v59 }
0x13ca   :  { %v1579_v57 = vpop.f32.mrf.mxu0 }
0x13d4   :  { %v1717_v58 = vpop.eup %1716 }
0x13d5   :  { %713 = vrot.lane.b32.xlu0 %v1717_v58, %s1816_s19 }
0x13d6   :  { %v1719_v60 = vpop.eup %1718 }
0x13d7   :  { %v707_v62 = vadd.f32 1.0, %v1719_v60 }
0x13d9   :  { %1720 = vrcp.f32 %v707_v62 }
0x13e6   :  { %v1721_v63 = vpop.eup %1720 }
0x13e7   :  { %v711_v4 = vmul.f32 %v1721_v63, %v643_v46 }
0x1447   :  { %v714_v1 = vpop.permute.xlu0 %713 }
0x1448   :  { %v716_v2 = vmul.f32 %v1721_v63, %v714_v1 }
0x144a   :  { %718 = vrot.lane.b32.xlu1 %v716_v2, %s1817_s3 }
0x144e   :  { %182 = vrot.lane.b32.xlu1 %v1913_v40, %s1817_s3 }
0x1452   :  { %339 = vrot.lane.b32.xlu1 %v1943_v22, %s1817_s3 }
0x1456   :  { %495 = vrot.lane.b32.xlu1 %v1973_v3, %s1817_s3  ;;  %v735_v3 = vld [vmem:[%s2219_s4 + $0x10] sm:$0xff] }
0x1457   :  { %v738_v15 = vpack.c.bf16 %v736_v11, %v735_v3 }
0x1459   :  { %1581 = vmatpush3.bf16.msra.mxu1 %v738_v15 }
0x145a   :  { %651 = vrot.lane.b32.xlu1 %v649_v49, %s1817_s3  ;;  %1582 = vmatprep.subr.bf16.mxu1 %v1813_v0 }
0x14bc   :  { %v719_v5 = vpop.permute.xlu1 %718 }
0x14bd   :  { %v721_v6 = vadd.f32 %v719_v5, %v711_v4 }
0x14bf   :  { %1722 = vtanh.f32 %v721_v6 }
0x14c0   :  { %v183_v7 = vpop.permute.xlu1 %182 }
0x14c1   :  { %186 = vst.msk [vmem:[#allocation3] sm:$0x3] %vm185_vm4, %v183_v7 }
0x14c4   :  { %v340_v9 = vpop.permute.xlu1 %339 }
0x14c5   :  { %342 = vst.msk [vmem:[#allocation3 + $0x4] sm:$0x3] %vm185_vm4, %v340_v9 }
0x14c8   :  { %v496_v40 = vpop.permute.xlu1 %495 }
0x14c9   :  { %498 = vst.msk [vmem:[#allocation3 + $0x8] sm:$0x3] %vm185_vm4, %v496_v40 }
0x14cc   :  { %v1723_v22 = vpop.eup %1722  ;;  %v652_v10 = vpop.permute.xlu1 %651 }
0x14cd   :  { %654 = vst.msk [vmem:[#allocation3 + $0xc] sm:$0x3] %vm185_vm4, %v652_v10  ;;  %724 = vrot.lane.b32.xlu0 %v1723_v22, %s1816_s19 }
0x14d1   :  { %261 = vrot.lane.b32.xlu0 %v1928_v61, %s1817_s3  ;;  %v734_v61 = vld [vmem:[%s2219_s4 + $0x8] sm:$0xff] }
0x14d2   :  { %v737_v17 = vpack.c.bf16 %v734_v61, %v733_v12 }
0x14d4   :  { %1583 = vmatpush3.bf16.msra.mxu1 %v737_v17 }
0x14d5   :  { %417 = vrot.lane.b32.xlu0 %v1958_v44, %s1817_s3  ;;  %v741_v44 = vld [vmem:[%s2220_s5 + $0x10] sm:$0xff]  ;;  %1596 = vmatprep.subr.bf16.mxu1 %v1813_v0 }
0x14d6   :  { %v2041_v16 = vpack.c.bf16 %v742_v8, %v741_v44 }
0x14d8   :  { %1589 = vmatpush3.bf16.msra.mxu0 %v2041_v16 }
0x14d9   :  { %573 = vrot.lane.b32.xlu0 %v1988_v26, %s1817_s3  ;;  %1590 = vmatprep.subr.bf16.mxu0 %v1813_v0 }
0x14dc   :  { %1591 = vmatpush3.bf16.msra.mxu0 %v2053_v20 }
0x14dd   :  { %1604 = vmatprep.subr.bf16.mxu0 %v1813_v0 }
0x14df   :  { %1593 = vmatmul.mubr.bf16.vlgmr.msra.gmra.mxu0 %v1815_v14 }
0x14e0   :  { %1605 = vmatpush3.bf16.msra.mxu0 %v2041_v16  ;;  %1608 = vmatprep.mubr.msk.bf16.mxu0 %vm1814_vm0, %v1813_v0 }
0x14e1   :  { %1606 = vmatprep.subr.bf16.mxu0 %v1813_v0 }
0x14e4   :  { %1607 = vmatpush3.bf16.msra.mxu0 %v2053_v20 }
0x14e5   :  { %1620 = vmatprep.subr.bf16.mxu0 %v1813_v0 }
0x153f   :  { %v725_v13 = vpop.permute.xlu0 %724 }
0x1540   :  { %v727_v21 = vmul.f32 %v1721_v63, %v725_v13 }
0x1542   :  { %729 = vrot.lane.b32.xlu0 %v727_v21, %s1817_s3 }
0x1543   :  { %v262_v23 = vpop.permute.xlu0 %261 }
0x1544   :  { %264 = vst.msk [vmem:[#allocation3 + $0x2] sm:$0x3] %vm185_vm4, %v262_v23 }
0x1547   :  { %v418_v24 = vpop.permute.xlu0 %417 }
0x1548   :  { %420 = vst.msk [vmem:[#allocation3 + $0x6] sm:$0x3] %vm185_vm4, %v418_v24 }
0x154b   :  { %v574_v25 = vpop.permute.xlu0 %573 }
0x154c   :  { %576 = vst.msk [vmem:[#allocation3 + $0xa] sm:$0x3] %vm185_vm4, %v574_v25 }
0x154f   :  { %v746_v14 = vld [vmem:[#allocation3] sm:$0xff] }
0x159f   :  { %v836_v29 = vpop.f32.mrf.mxu0 }
0x15a1   :  { %v1594_v30 = vpop.f32.mrf.mxu0 }
0x15a3   :  { %v839_v31 = vpop.f32.mrf.mxu0 }
0x15a5   :  { %v1595_v32 = vpop.f32.mrf.mxu0 }
0x15b4   :  { %v730_v26 = vpop.permute.xlu0 %729 }
0x15b5   :  { %732 = vst.msk [vmem:[#allocation3 + $0xe] sm:$0x3] %vm185_vm4, %v730_v26 }
0x15bc   :  { %v747_v27 = vld [vmem:[#allocation3 + $0x8] sm:$0xff] }
0x15bd   :  { %v748_v28 = vpack.c.bf16 %v747_v27, %v746_v14 }
0x15bf   :  { %1585 = vmatmul.mubr.msk.bf16.vlgmr.msra.gmra.mxu1 %vm112_vm3, %v748_v28 }
0x15c0   :  { %1597 = vmatpush3.bf16.msra.mxu1 %v2041_v16  ;;  %1600 = vmatprep.mubr.msk.bf16.mxu1 %vm1814_vm0, %v1813_v0 }
0x15c1   :  { %1598 = vmatprep.subr.bf16.mxu1 %v1813_v0 }
0x15c4   :  { %1599 = vmatpush3.bf16.msra.mxu1 %v2053_v20 }
0x15c5   :  { %1612 = vmatprep.subr.bf16.mxu1 %v1813_v0 }
0x167f   :  { %v792_v34 = vpop.f32.mrf.mxu1 }
0x1680   :  { %v793_v35 = vadd.f32 %v1440_v33, %v792_v34 }
0x1681   :  { %v1586_v36 = vpop.f32.mrf.mxu1 }
0x1682   :  { %799 = vst [vmem:[#allocation2] sm:$0xff] %v793_v35 }
0x1683   :  { %v795_v37 = vpop.f32.mrf.mxu1 }
0x1684   :  { %v796_v38 = vadd.f32 %v1440_v33, %v795_v37 }
0x1685   :  { %v1587_v39 = vpop.f32.mrf.mxu1 }
0x1686   :  { %800 = vst [vmem:[#allocation2 + $0x8] sm:$0xff] %v796_v38 }
0x1689   :  { %v801_v41 = vld [vmem:[#allocation2] sm:$0x3]  ;;  %v872_v59 = vld [vmem:[#allocation2 + $0x2] sm:$0x3]  ;;  %v950_v17 = vld [vmem:[#allocation2 + $0x4] sm:$0x3] }
0x168a   :  { %v842_v42 = vadd.f32 %v836_v29, %v801_v41  ;;  %v1028_v38 = vld [vmem:[#allocation2 + $0x6] sm:$0x3] }
0x168c   :  { %1724 = vtanh.f32 %v842_v42  ;;  %v1442_v45 = vmul.f32 -1.442695, %v842_v42 }
0x168e   :  { %1726 = vpow2.f32 %v1442_v45 }
0x1699   :  { %v1725_v43 = vpop.eup %1724 }
0x169a   :  { %852 = vrot.lane.b32.xlu1 %v1725_v43, %s1816_s19 }
0x169b   :  { %v1727_v46 = vpop.eup %1726 }
0x169c   :  { %v846_v47 = vadd.f32 1.0, %v1727_v46 }
0x169e   :  { %1728 = vrcp.f32 %v846_v47 }
0x16ab   :  { %v1729_v48 = vpop.eup %1728 }
0x16ac   :  { %v850_v51 = vmul.f32 0.0, %v1729_v48 }
0x170c   :  { %v853_v49 = vpop.permute.xlu1 %852 }
0x170d   :  { %v855_v50 = vmul.f32 %v1729_v48, %v853_v49 }
0x170f   :  { %857 = vrot.lane.b32.xlu0 %v855_v50, %s1817_s3 }
0x1781   :  { %v858_v52 = vpop.permute.xlu0 %857 }
0x1782   :  { %v860_v53 = vadd.f32 %v858_v52, %v850_v51 }
0x1784   :  { %1730 = vtanh.f32 %v860_v53 }
0x1791   :  { %v1731_v54 = vpop.eup %1730 }
0x1792   :  { %863 = vrot.lane.b32.xlu1 %v1731_v54, %s1816_s19 }
0x1804   :  { %v864_v55 = vpop.permute.xlu1 %863 }
0x1805   :  { %v2082_v56 = vmul.f32 %v1729_v48, %v864_v55 }
0x1807   :  { %v873_v57 = vpack.c.bf16 %v2082_v56, %v2082_v56 }
0x1809   :  { %875 = vrot.lane.b32.xlu0 %v873_v57, %s1817_s3 }
0x187b   :  { %v876_v58 = vpop.permute.xlu0 %875 }
0x187c   :  { %1601 = vmatmul.mubr.msk.bf16.vlgmr.msra.gmra.mxu1 %vm112_vm3, %v876_v58 }
0x187d   :  { %1613 = vmatpush3.bf16.msra.mxu1 %v2041_v16  ;;  %1616 = vmatprep.mubr.msk.bf16.mxu1 %vm1814_vm0, %v1813_v0 }
0x187e   :  { %1614 = vmatprep.subr.bf16.mxu1 %v1813_v0 }
0x1881   :  { %1615 = vmatpush3.bf16.msra.mxu1 %v2053_v20 }
0x1882   :  { %1628 = vmatprep.subr.bf16.mxu1 %v1813_v0 }
0x193c   :  { %v914_v60 = vpop.f32.mrf.mxu1 }
0x193d   :  { %v920_v62 = vadd.f32 %v914_v60, %v872_v59 }
0x193e   :  { %v1602_v63 = vpop.f32.mrf.mxu1 }
0x193f   :  { %1732 = vtanh.f32 %v920_v62  ;;  %v1444_v5 = vmul.f32 -1.442695, %v920_v62  ;;  %v1106_v63 = vld [vmem:[#allocation2 + $0x8] sm:$0x3] }
0x1940   :  { %v917_v1 = vpop.f32.mrf.mxu1 }
0x1941   :  { %1734 = vpow2.f32 %v1444_v5 }
0x1942   :  { %v1603_v2 = vpop.f32.mrf.mxu1 }
0x194c   :  { %v1733_v4 = vpop.eup %1732 }
0x194d   :  { %930 = vrot.lane.b32.xlu1 %v1733_v4, %s1816_s19 }
0x194e   :  { %v1735_v6 = vpop.eup %1734 }
0x194f   :  { %v924_v7 = vadd.f32 1.0, %v1735_v6 }
0x1951   :  { %1736 = vrcp.f32 %v924_v7 }
0x195e   :  { %v1737_v9 = vpop.eup %1736 }
0x195f   :  { %v928_v10 = vmul.f32 %v1737_v9, %v860_v53 }
0x19bf   :  { %v931_v40 = vpop.permute.xlu1 %930 }
0x19c0   :  { %v933_v22 = vmul.f32 %v1737_v9, %v931_v40 }
0x19c2   :  { %935 = vrot.lane.b32.xlu0 %v933_v22, %s1817_s3 }
0x1a34   :  { %v936_v3 = vpop.permute.xlu0 %935 }
0x1a35   :  { %v938_v11 = vadd.f32 %v936_v3, %v928_v10 }
0x1a37   :  { %1738 = vtanh.f32 %v938_v11 }
0x1a44   :  { %v1739_v12 = vpop.eup %1738 }
0x1a45   :  { %941 = vrot.lane.b32.xlu1 %v1739_v12, %s1816_s19 }
0x1ab7   :  { %v942_v15 = vpop.permute.xlu1 %941 }
0x1ab8   :  { %v2097_v61 = vmul.f32 %v1737_v9, %v942_v15 }
0x1aba   :  { %v951_v44 = vpack.c.bf16 %v2097_v61, %v2097_v61 }
0x1abc   :  { %953 = vrot.lane.b32.xlu0 %v951_v44, %s1817_s3 }
0x1b2e   :  { %v954_v8 = vpop.permute.xlu0 %953 }
0x1b2f   :  { %1609 = vmatmul.mubr.msk.bf16.vlgmr.msra.gmra.mxu0 %vm112_vm3, %v954_v8 }
0x1b30   :  { %1621 = vmatpush3.bf16.msra.mxu0 %v2041_v16  ;;  %1624 = vmatprep.mubr.msk.bf16.mxu0 %vm1814_vm0, %v1813_v0 }
0x1b31   :  { %1622 = vmatprep.subr.bf16.mxu0 %v1813_v0 }
0x1b34   :  { %1623 = vmatpush3.bf16.msra.mxu0 %v2053_v20 }
0x1b35   :  { %1636 = vmatprep.subr.bf16.mxu0 %v1813_v0 }
0x1bef   :  { %v992_v18 = vpop.f32.mrf.mxu0 }
0x1bf0   :  { %v998_v19 = vadd.f32 %v992_v18, %v950_v17 }
0x1bf1   :  { %v1610_v13 = vpop.f32.mrf.mxu0 }
0x1bf2   :  { %1740 = vtanh.f32 %v998_v19  ;;  %v1446_v25 = vmul.f32 -1.442695, %v998_v19 }
0x1bf3   :  { %v995_v21 = vpop.f32.mrf.mxu0 }
0x1bf4   :  { %1742 = vpow2.f32 %v1446_v25  ;;  %v1184_v21 = vld [vmem:[#allocation2 + $0xa] sm:$0x3] }
0x1bf5   :  { %v1611_v23 = vpop.f32.mrf.mxu0 }
0x1bff   :  { %v1741_v24 = vpop.eup %1740 }
0x1c00   :  { %1008 = vrot.lane.b32.xlu1 %v1741_v24, %s1816_s19 }
0x1c01   :  { %v1743_v26 = vpop.eup %1742 }
0x1c02   :  { %v1002_v14 = vadd.f32 1.0, %v1743_v26 }
0x1c04   :  { %1744 = vrcp.f32 %v1002_v14 }
0x1c11   :  { %v1745_v27 = vpop.eup %1744 }
0x1c12   :  { %v1006_v30 = vmul.f32 %v1745_v27, %v938_v11 }
0x1c72   :  { %v1009_v28 = vpop.permute.xlu1 %1008 }
0x1c73   :  { %v1011_v29 = vmul.f32 %v1745_v27, %v1009_v28 }
0x1c75   :  { %1013 = vrot.lane.b32.xlu0 %v1011_v29, %s1817_s3 }
0x1ce7   :  { %v1014_v31 = vpop.permute.xlu0 %1013 }
0x1ce8   :  { %v1016_v32 = vadd.f32 %v1014_v31, %v1006_v30 }
0x1cea   :  { %1746 = vtanh.f32 %v1016_v32 }
0x1cf7   :  { %v1747_v33 = vpop.eup %1746 }
0x1cf8   :  { %1019 = vrot.lane.b32.xlu1 %v1747_v33, %s1816_s19 }
0x1d6a   :  { %v1020_v34 = vpop.permute.xlu1 %1019 }
0x1d6b   :  { %v2112_v35 = vmul.f32 %v1745_v27, %v1020_v34 }
0x1d6d   :  { %v1029_v36 = vpack.c.bf16 %v2112_v35, %v2112_v35 }
0x1d6f   :  { %1031 = vrot.lane.b32.xlu0 %v1029_v36, %s1817_s3 }
0x1de1   :  { %v1032_v37 = vpop.permute.xlu0 %1031 }
0x1de2   :  { %1617 = vmatmul.mubr.msk.bf16.vlgmr.msra.gmra.mxu1 %vm112_vm3, %v1032_v37 }
0x1de3   :  { %1629 = vmatpush3.bf16.msra.mxu1 %v2041_v16  ;;  %1632 = vmatprep.mubr.msk.bf16.mxu1 %vm1814_vm0, %v1813_v0 }
0x1de4   :  { %1630 = vmatprep.subr.bf16.mxu1 %v1813_v0 }
0x1de7   :  { %1631 = vmatpush3.bf16.msra.mxu1 %v2053_v20 }
0x1de8   :  { %1644 = vmatprep.subr.bf16.mxu1 %v1813_v0 }
0x1ea2   :  { %v1070_v39 = vpop.f32.mrf.mxu1 }
0x1ea3   :  { %v1076_v41 = vadd.f32 %v1070_v39, %v1028_v38 }
0x1ea4   :  { %v1618_v42 = vpop.f32.mrf.mxu1 }
0x1ea5   :  { %1748 = vtanh.f32 %v1076_v41  ;;  %v1448_v47 = vmul.f32 -1.442695, %v1076_v41  ;;  %v1262_v41 = vld [vmem:[#allocation2 + $0xc] sm:$0x3] }
0x1ea6   :  { %v1073_v43 = vpop.f32.mrf.mxu1 }
0x1ea7   :  { %1750 = vpow2.f32 %v1448_v47 }
0x1ea8   :  { %v1619_v45 = vpop.f32.mrf.mxu1 }
0x1eb2   :  { %v1749_v46 = vpop.eup %1748 }
0x1eb3   :  { %1086 = vrot.lane.b32.xlu1 %v1749_v46, %s1816_s19 }
0x1eb4   :  { %v1751_v48 = vpop.eup %1750 }
0x1eb5   :  { %v1080_v49 = vadd.f32 1.0, %v1751_v48 }
0x1eb7   :  { %1752 = vrcp.f32 %v1080_v49 }
0x1ec4   :  { %v1753_v50 = vpop.eup %1752 }
0x1ec5   :  { %v1084_v53 = vmul.f32 %v1753_v50, %v1016_v32 }
0x1f25   :  { %v1087_v51 = vpop.permute.xlu1 %1086 }
0x1f26   :  { %v1089_v52 = vmul.f32 %v1753_v50, %v1087_v51 }
0x1f28   :  { %1091 = vrot.lane.b32.xlu0 %v1089_v52, %s1817_s3 }
0x1f9a   :  { %v1092_v54 = vpop.permute.xlu0 %1091 }
0x1f9b   :  { %v1094_v55 = vadd.f32 %v1092_v54, %v1084_v53 }
0x1f9d   :  { %1754 = vtanh.f32 %v1094_v55 }
0x1faa   :  { %v1755_v57 = vpop.eup %1754 }
0x1fab   :  { %1097 = vrot.lane.b32.xlu1 %v1755_v57, %s1816_s19 }
0x201d   :  { %v1098_v58 = vpop.permute.xlu1 %1097 }
0x201e   :  { %v2127_v59 = vmul.f32 %v1753_v50, %v1098_v58 }
0x2020   :  { %v1107_v60 = vpack.c.bf16 %v2127_v59, %v2127_v59 }
0x2022   :  { %1109 = vrot.lane.b32.xlu0 %v1107_v60, %s1817_s3 }
0x2094   :  { %v1110_v62 = vpop.permute.xlu0 %1109 }
0x2095   :  { %1625 = vmatmul.mubr.msk.bf16.vlgmr.msra.gmra.mxu0 %vm112_vm3, %v1110_v62 }
0x2096   :  { %1637 = vmatpush3.bf16.msra.mxu0 %v2041_v16  ;;  %1640 = vmatprep.mubr.msk.bf16.mxu0 %vm1814_vm0, %v1813_v0 }
0x2097   :  { %1638 = vmatprep.subr.bf16.mxu0 %v1813_v0 }
0x209a   :  { %1639 = vmatpush3.bf16.msra.mxu0 %v2053_v20 }
0x2155   :  { %v1148_v1 = vpop.f32.mrf.mxu0 }
0x2156   :  { %v1154_v2 = vadd.f32 %v1148_v1, %v1106_v63 }
0x2157   :  { %v1626_v4 = vpop.f32.mrf.mxu0 }
0x2158   :  { %1756 = vtanh.f32 %v1154_v2  ;;  %v1450_v9 = vmul.f32 -1.442695, %v1154_v2  ;;  %v1340_v4 = vld [vmem:[#allocation2 + $0xe] sm:$0x3] }
0x2159   :  { %v1151_v5 = vpop.f32.mrf.mxu0 }
0x215a   :  { %1758 = vpow2.f32 %v1450_v9 }
0x215b   :  { %v1627_v6 = vpop.f32.mrf.mxu0 }
0x2165   :  { %v1757_v7 = vpop.eup %1756 }
0x2166   :  { %1164 = vrot.lane.b32.xlu1 %v1757_v7, %s1816_s19 }
0x2167   :  { %v1759_v40 = vpop.eup %1758 }
0x2168   :  { %v1158_v22 = vadd.f32 1.0, %v1759_v40 }
0x216a   :  { %1760 = vrcp.f32 %v1158_v22 }
0x2177   :  { %v1761_v10 = vpop.eup %1760 }
0x2178   :  { %v1162_v12 = vmul.f32 %v1761_v10, %v1094_v55 }
0x21d8   :  { %v1165_v3 = vpop.permute.xlu1 %1164 }
0x21d9   :  { %v1167_v11 = vmul.f32 %v1761_v10, %v1165_v3 }
0x21db   :  { %1169 = vrot.lane.b32.xlu0 %v1167_v11, %s1817_s3 }
0x224d   :  { %v1170_v15 = vpop.permute.xlu0 %1169 }
0x224e   :  { %v1172_v44 = vadd.f32 %v1170_v15, %v1162_v12 }
0x2250   :  { %1762 = vtanh.f32 %v1172_v44 }
0x225d   :  { %v1763_v8 = vpop.eup %1762 }
0x225e   :  { %1175 = vrot.lane.b32.xlu1 %v1763_v8, %s1816_s19 }
0x22d0   :  { %v1176_v17 = vpop.permute.xlu1 %1175 }
0x22d1   :  { %v2141_v18 = vmul.f32 %v1761_v10, %v1176_v17 }
0x22d3   :  { %v1185_v19 = vpack.c.bf16 %v2141_v18, %v2141_v18 }
0x22d5   :  { %1187 = vrot.lane.b32.xlu0 %v1185_v19, %s1817_s3 }
0x2347   :  { %v1188_v13 = vpop.permute.xlu0 %1187 }
0x2348   :  { %1633 = vmatmul.mubr.msk.bf16.vlgmr.msra.gmra.mxu1 %vm112_vm3, %v1188_v13 }
0x2349   :  { %1645 = vmatpush3.bf16.msra.mxu1 %v2041_v16  ;;  %1648 = vmatprep.mubr.msk.bf16.mxu1 %vm1814_vm0, %v1813_v0 }
0x234a   :  { %1646 = vmatprep.subr.bf16.mxu1 %v1813_v0 }
0x234d   :  { %1647 = vmatpush3.bf16.msra.mxu1 %v2053_v20 }
0x2408   :  { %v1226_v23 = vpop.f32.mrf.mxu1 }
0x2409   :  { %v1232_v24 = vadd.f32 %v1226_v23, %v1184_v21 }
0x240a   :  { %v1634_v25 = vpop.f32.mrf.mxu1 }
0x240b   :  { %1764 = vtanh.f32 %v1232_v24  ;;  %v1452_v28 = vmul.f32 -1.442695, %v1232_v24 }
0x240c   :  { %v1229_v26 = vpop.f32.mrf.mxu1 }
0x240d   :  { %1766 = vpow2.f32 %v1452_v28 }
0x240e   :  { %v1635_v14 = vpop.f32.mrf.mxu1 }
0x2418   :  { %v1765_v27 = vpop.eup %1764 }
0x2419   :  { %1242 = vrot.lane.b32.xlu1 %v1765_v27, %s1816_s19 }
0x241a   :  { %v1767_v16 = vpop.eup %1766 }
0x241b   :  { %v1236_v29 = vadd.f32 1.0, %v1767_v16 }
0x241d   :  { %1768 = vrcp.f32 %v1236_v29 }
0x242a   :  { %v1769_v30 = vpop.eup %1768 }
0x242b   :  { %v1240_v20 = vmul.f32 %v1769_v30, %v1172_v44 }
0x248b   :  { %v1243_v31 = vpop.permute.xlu1 %1242 }
0x248c   :  { %v1245_v0 = vmul.f32 %v1769_v30, %v1243_v31 }
0x248e   :  { %1247 = vrot.lane.b32.xlu0 %v1245_v0, %s1817_s3 }
0x2500   :  { %v1248_v32 = vpop.permute.xlu0 %1247 }
0x2501   :  { %v1250_v33 = vadd.f32 %v1248_v32, %v1240_v20 }
0x2503   :  { %1770 = vtanh.f32 %v1250_v33 }
0x2510   :  { %v1771_v34 = vpop.eup %1770 }
0x2511   :  { %1253 = vrot.lane.b32.xlu1 %v1771_v34, %s1816_s19 }
0x2583   :  { %v1254_v36 = vpop.permute.xlu1 %1253 }
0x2584   :  { %v2155_v37 = vmul.f32 %v1769_v30, %v1254_v36 }
0x2586   :  { %v1263_v38 = vpack.c.bf16 %v2155_v37, %v2155_v37 }
0x2588   :  { %1265 = vrot.lane.b32.xlu0 %v1263_v38, %s1817_s3 }
0x25fa   :  { %v1266_v39 = vpop.permute.xlu0 %1265 }
0x25fb   :  { %1641 = vmatmul.mubr.msk.bf16.vlgmr.msra.gmra.mxu0 %vm112_vm3, %v1266_v39 }
0x26bb   :  { %v1304_v42 = vpop.f32.mrf.mxu0 }
0x26bc   :  { %v1310_v43 = vadd.f32 %v1304_v42, %v1262_v41 }
0x26bd   :  { %v1642_v45 = vpop.f32.mrf.mxu0 }
0x26be   :  { %1772 = vtanh.f32 %v1310_v43  ;;  %v1454_v49 = vmul.f32 -1.442695, %v1310_v43 }
0x26bf   :  { %v1307_v46 = vpop.f32.mrf.mxu0 }
0x26c0   :  { %1774 = vpow2.f32 %v1454_v49 }
0x26c1   :  { %v1643_v47 = vpop.f32.mrf.mxu0 }
0x26cb   :  { %v1773_v48 = vpop.eup %1772 }
0x26cc   :  { %1320 = vrot.lane.b32.xlu1 %v1773_v48, %s1816_s19 }
0x26cd   :  { %v1775_v50 = vpop.eup %1774 }
0x26ce   :  { %v1314_v51 = vadd.f32 1.0, %v1775_v50 }
0x26d0   :  { %1776 = vrcp.f32 %v1314_v51 }
0x26dd   :  { %v1777_v52 = vpop.eup %1776 }
0x26de   :  { %v1318_v55 = vmul.f32 %v1777_v52, %v1250_v33 }
0x273e   :  { %v1321_v53 = vpop.permute.xlu1 %1320 }
0x273f   :  { %v1323_v54 = vmul.f32 %v1777_v52, %v1321_v53 }
0x2741   :  { %1325 = vrot.lane.b32.xlu0 %v1323_v54, %s1817_s3 }
0x27b3   :  { %v1326_v57 = vpop.permute.xlu0 %1325 }
0x27b4   :  { %v1328_v58 = vadd.f32 %v1326_v57, %v1318_v55 }
0x27b6   :  { %1778 = vtanh.f32 %v1328_v58 }
0x27c3   :  { %v1779_v60 = vpop.eup %1778 }
0x27c4   :  { %1331 = vrot.lane.b32.xlu1 %v1779_v60, %s1816_s19 }
0x2836   :  { %v1332_v62 = vpop.permute.xlu1 %1331 }
0x2837   :  { %v1334_v63 = vmul.f32 %v1777_v52, %v1332_v62 }
0x2839   :  { %v1341_v1 = vpack.c.bf16 %v1334_v63, %v1334_v63 }
0x283b   :  { %1343 = vrot.lane.b32.xlu0 %v1341_v1, %s1817_s3 }
0x28ad   :  { %v1344_v2 = vpop.permute.xlu0 %1343 }
0x28ae   :  { %1649 = vmatmul.mubr.msk.bf16.vlgmr.msra.gmra.mxu1 %vm112_vm3, %v1344_v2 }
0x296e   :  { %v1382_v5 = vpop.f32.mrf.mxu1 }
0x296f   :  { %v1388_v6 = vadd.f32 %v1382_v5, %v1340_v4 }
0x2970   :  { %v1650_v7 = vpop.f32.mrf.mxu1 }
0x2971   :  { %1780 = vtanh.f32 %v1388_v6  ;;  %v1456_v10 = vmul.f32 -1.442695, %v1388_v6 }
0x2972   :  { %v1385_v9 = vpop.f32.mrf.mxu1 }
0x2973   :  { %1782 = vpow2.f32 %v1456_v10 }
0x2974   :  { %v1651_v40 = vpop.f32.mrf.mxu1 }
0x297e   :  { %v1781_v22 = vpop.eup %1780 }
0x297f   :  { %1398 = vrot.lane.b32.xlu1 %v1781_v22, %s1816_s19 }
0x2980   :  { %v1783_v3 = vpop.eup %1782 }
0x2981   :  { %v1392_v11 = vadd.f32 1.0, %v1783_v3 }
0x2983   :  { %1784 = vrcp.f32 %v1392_v11 }
0x2990   :  { %v1785_v12 = vpop.eup %1784 }
0x2991   :  { %v1396_v8 = vmul.f32 %v1785_v12, %v1328_v58 }
0x29f1   :  { %v1399_v15 = vpop.permute.xlu1 %1398 }
0x29f2   :  { %v1401_v44 = vmul.f32 %v1785_v12, %v1399_v15 }
0x29f4   :  { %1403 = vrot.lane.b32.xlu0 %v1401_v44, %s1817_s3 }
0x29f8   :  { %868 = vrot.lane.b32.xlu0 %v2082_v56, %s1817_s3 }
0x29fc   :  { %1024 = vrot.lane.b32.xlu0 %v2112_v35, %s1817_s3 }
0x2a00   :  { %1180 = vrot.lane.b32.xlu0 %v2141_v18, %s1817_s3 }
0x2a04   :  { %1336 = vrot.lane.b32.xlu0 %v1334_v63, %s1817_s3 }
0x2a66   :  { %v1404_v17 = vpop.permute.xlu0 %1403 }
0x2a67   :  { %v1406_v19 = vadd.f32 %v1404_v17, %v1396_v8 }
0x2a69   :  { %1786 = vtanh.f32 %v1406_v19 }
0x2a6a   :  { %v869_v13 = vpop.permute.xlu0 %868 }
0x2a6b   :  { %871 = vst.msk [vmem:[%s2222_s7] sm:$0x3] %vm185_vm4, %v869_v13 }
0x2a6e   :  { %v1025_v21 = vpop.permute.xlu0 %1024 }
0x2a6f   :  { %1027 = vst.msk [vmem:[%s2222_s7 + $0x4] sm:$0x3] %vm185_vm4, %v1025_v21 }
0x2a72   :  { %v1181_v56 = vpop.permute.xlu0 %1180 }
0x2a73   :  { %1183 = vst.msk [vmem:[%s2222_s7 + $0x8] sm:$0x3] %vm185_vm4, %v1181_v56 }
0x2a76   :  { %v1787_v35 = vpop.eup %1786  ;;  %v1337_v18 = vpop.permute.xlu0 %1336 }
0x2a77   :  { %1339 = vst.msk [vmem:[%s2222_s7 + $0xc] sm:$0x3] %vm185_vm4, %v1337_v18  ;;  %1409 = vrot.lane.b32.xlu1 %v1787_v35, %s1816_s19 }
0x2a7b   :  { %946 = vrot.lane.b32.xlu1 %v2097_v61, %s1817_s3 }
0x2a7f   :  { %1102 = vrot.lane.b32.xlu1 %v2127_v59, %s1817_s3 }
0x2a83   :  { %1258 = vrot.lane.b32.xlu1 %v2155_v37, %s1817_s3 }
0x2ae9   :  { %v1410_v23 = vpop.permute.xlu1 %1409 }
0x2aea   :  { %v1412_v24 = vmul.f32 %v1785_v12, %v1410_v23 }
0x2aec   :  { %1414 = vrot.lane.b32.xlu1 %v1412_v24, %s1817_s3 }
0x2aed   :  { %v947_v25 = vpop.permute.xlu1 %946 }
0x2aee   :  { %949 = vst.msk [vmem:[%s2222_s7 + $0x2] sm:$0x3] %vm185_vm4, %v947_v25 }
0x2af1   :  { %v1103_v26 = vpop.permute.xlu1 %1102 }
0x2af2   :  { %1105 = vst.msk [vmem:[%s2222_s7 + $0x6] sm:$0x3] %vm185_vm4, %v1103_v26 }
0x2af5   :  { %v1259_v61 = vpop.permute.xlu1 %1258 }
0x2af6   :  { %1261 = vst.msk [vmem:[%s2222_s7 + $0xa] sm:$0x3] %vm185_vm4, %v1259_v61 }
0x2b5e   :  { %v1415_v59 = vpop.permute.xlu1 %1414 }
0x2b5f   :  { %1417 = vst.msk [vmem:[%s2222_s7 + $0xe] sm:$0x3] %vm185_vm4, %v1415_v59 }
0x2b60   :  { %1422 = vsyncpa [#allocation5], 1 }

</bundles_post_ra>
